<compile_context>
chip_gen: v7x
topology: tpu7x:2x2x1
jax: 0.10.0
libtpu: 0.0.40
codegen_flags: <defaults>
</compile_context>

<pallas_src>
import functools
import math

import numpy as np

import jax
import jax.numpy as jnp
from jax import lax
from jax.experimental import pallas as pl
from jax.experimental.pallas import tpu as pltpu


def _warp_kernel(kmin_ref, kmax_ref,              # scalar prefetch (SMEM): (B*n_q,)
                 x_ref, flow_ref,                 # (C, TK) , (2, TQ)
                 o_ref,                           # (C, TQ)
                 acc_ref, wgt_ref, idx_ref, iota_ref,   # scratch
                 *, H: int, W: int, TQ: int, TK: int,
                 mxu_dtype, mt_dtype):
    b = pl.program_id(0)
    q = pl.program_id(1)
    k = pl.program_id(2)
    nk = pl.num_programs(2)
    base = b * pl.num_programs(1) + q

    # ---- Once per output tile (k == 0): sampling indices & bilinear weights.
    #      Index math is always f32 / int32 (never x dtype).
    @pl.when(k == 0)
    def _():
        acc_ref[...] = jnp.zeros_like(acc_ref)
        # Hoisted out of the k loop: (TK, TQ) row iota cached in scratch.
        iota_ref[...] = lax.broadcasted_iota(jnp.int32, (TK, TQ), 0)

        p = (q * TQ + lax.broadcasted_iota(jnp.int32, (1, TQ), 1)
             ).astype(jnp.float32)                       # output flat pixel id
        gy = jnp.floor(p / W)                            # exact for HW < 2^24
        gx = p - gy * W

        fx = flow_ref[0:1, :].astype(jnp.float32)        # dx
        fy = flow_ref[1:2, :].astype(jnp.float32)        # dy
        # align_corners=True: 2*s/(dim-1)-1 maps back to pixel coordinate s,
        # so the effective sample position is simply grid + flow.
        sx = gx + fx
        sy = gy + fy

        x0f = jnp.floor(sx)
        y0f = jnp.floor(sy)
        wx1 = sx - x0f
        wx0 = 1.0 - wx1
        wy1 = sy - y0f
        wy0 = 1.0 - wy1

        x0 = x0f.astype(jnp.int32)
        y0 = y0f.astype(jnp.int32)
        vx0 = (x0 >= 0) & (x0 <= W - 1)
        vx1 = (x0 + 1 >= 0) & (x0 + 1 <= W - 1)
        vy0 = (y0 >= 0) & (y0 <= H - 1)
        vy1 = (y0 + 1 >= 0) & (y0 + 1 <= H - 1)

        zero = jnp.zeros_like(wx0)
        # zeros padding: out-of-bounds corners contribute nothing (this is
        # also what neutralizes the row-wrap aliasing of idx+1 / idx+W+1).
        wgt_ref[0:1, :] = jnp.where(vy0 & vx0, wy0 * wx0, zero)
        wgt_ref[1:2, :] = jnp.where(vy0 & vx1, wy0 * wx1, zero)
        wgt_ref[2:3, :] = jnp.where(vy1 & vx0, wy1 * wx0, zero)
        wgt_ref[3:4, :] = jnp.where(vy1 & vx1, wy1 * wx1, zero)
        idx_ref[...] = y0 * W + x0                       # top-left corner id

    # ---- Per in-band source tile: build the (TK, TQ) slice of MT, matmul.
    in_band = k <= (kmax_ref[base] - kmin_ref[base])

    @pl.when(in_band)
    def _():
        k_src = kmin_ref[base] + k                       # actual source tile
        rel = idx_ref[...] - k_src * TK                  # (1, TQ) int32
        iota = iota_ref[...]                             # (TK, TQ) int32
        # Corner weights stay exact f32 in scratch; the (1, TQ) casts here are
        # negligible while the (TK, TQ) select chain runs in mt_dtype
        # (bf16 on v6e/v7x VPUs, f32 on v4/v5).
        w00 = wgt_ref[0:1, :].astype(mt_dtype)
        w01 = wgt_ref[1:2, :].astype(mt_dtype)
        w10 = wgt_ref[2:3, :].astype(mt_dtype)
        w11 = wgt_ref[3:4, :].astype(mt_dtype)
        zero = jnp.zeros((), mt_dtype)
        mt = jnp.where(iota == rel, w00,
             jnp.where(iota == rel + 1, w01,
             jnp.where(iota == rel + W, w10,
             jnp.where(iota == rel + (W + 1), w11, zero))))
        acc_ref[...] += lax.dot_general(
            x_ref[...].astype(mxu_dtype), mt.astype(mxu_dtype),
            dimension_numbers=(((1,), (0,)), ((), ())),
            preferred_element_type=jnp.float32)

    # ---- Last band step: write the output block (lane-dense store).
    @pl.when(k == nk - 1)
    def _():
        o_ref[...] = acc_ref[...].astype(o_ref.dtype)


def _pick_tile(hw: int, w: int, target: int) -> int:
    """Largest divisor of hw that is a multiple of 128, capped near `target`,
    preferring row (W) alignment so the source band is row-exact.  Falls back
    to the full extent (always a legal block)."""
    if hw <= target or hw % 128 != 0:
        return hw
    step = 128 * w // math.gcd(128, w) if w > 0 else 128   # lcm(128, W)
    if step > max(target, 128) or hw % step != 0:
        step = 128
    t = max(step, (target // step) * step)
    while hw % t != 0:
        t -= step
    return t


def _mt_build_dtype(compute_dtype):
    """bf16 MT build on chips with a bf16 VPU (v6e/v7x); f32 on v4/v5."""
    if np.dtype(compute_dtype) == np.dtype(np.float32):
        return jnp.float32
    try:
        kind = jax.devices()[0].device_kind.lower()
    except Exception:
        return compute_dtype
    if "v4" in kind or "v5" in kind:
        return jnp.float32
    return compute_dtype


def warping_layer(x, flow, *, tq: int = 512, tk: int = 512,
                  compute_dtype=jnp.bfloat16, mt_dtype=None, max_band=None):
    """Pallas equivalent of WarpingLayer.forward(x, flow).

    x:    (B, C, H, W) float32
    flow: (B, 2, H, W) float32  (flow[:,0]=dx, flow[:,1]=dy, finite values)
    returns (B, C, H, W) with x.dtype
    """
    B, C, H, W = x.shape
    if H < 2 or W < 2:
        raise ValueError("WarpingLayer needs H >= 2 and W >= 2 "
                         "(align_corners normalization divides by dim-1).")
    HW = H * W
    TQ = _pick_tile(HW, W, tq)
    TK = _pick_tile(HW, W, tk)
    n_q = HW // TQ
    n_k = HW // TK
    if mt_dtype is None:
        mt_dtype = _mt_build_dtype(compute_dtype)

    # Channels-first, lane-dense layout: a plain reshape of NCHW (no transpose).
    # x is kept in its original dtype; the per-tile cast happens in-kernel.
    x_cf = x.reshape(B, C, HW)
    flow_cf = flow.reshape(B, 2, HW).astype(jnp.float32)

    # Flow-bounded source-tile band per (batch, q-tile): cheap O(B*HW) pre-pass
    # using exactly the same f32 index math as the kernel (so the band is
    # consistent with the kernel's idx00 at any resolution).
    p = jnp.arange(HW, dtype=jnp.float32)[None, :]
    gy = jnp.floor(p / W)
    gx = p - gy * W
    sx = gx + flow_cf[:, 0]
    sy = gy + flow_cf[:, 1]
    idx00 = (jnp.floor(sy).astype(jnp.int32) * W
             + jnp.floor(sx).astype(jnp.int32)).reshape(B, n_q, TQ)
    kmin = jnp.clip(jnp.min(idx00, axis=-1) // TK, 0, n_k - 1).astype(jnp.int32)
    kmax = jnp.clip((jnp.max(idx00, axis=-1) + (W + 1)) // TK,
                    0, n_k - 1).astype(jnp.int32)

    # Static k extent of the grid = widest band over all (b, q). Needs concrete
    # flow; under jit (abstract flow) fall back to the full source sweep.
    if max_band is None:
        try:
            max_band = int(jnp.max(kmax - kmin)) + 1
        except Exception:  # traced flow: cannot read the band width
            max_band = n_k
    max_band = max(1, min(int(max_band), n_k))
    kmax = jnp.minimum(kmax, kmin + (max_band - 1))   # keep band consistent

    kmin_flat = kmin.reshape(-1)   # (B * n_q,) int32, SMEM scalar prefetch
    kmax_flat = kmax.reshape(-1)

    def x_index_map(b, q, k, lo, hi):
        f = b * n_q + q
        # Clamp to the band: out-of-band steps repeat the last in-band block
        # index, so Pallas elides their DMA entirely.
        return (b, 0, jnp.minimum(lo[f] + k, hi[f]))

    kernel = functools.partial(_warp_kernel, H=H, W=W, TQ=TQ, TK=TK,
                               mxu_dtype=compute_dtype, mt_dtype=mt_dtype)
    out_cf = pl.pallas_call(
        kernel,
        out_shape=jax.ShapeDtypeStruct((B, C, HW), x.dtype),
        grid_spec=pltpu.PrefetchScalarGridSpec(
            num_scalar_prefetch=2,
            grid=(B, n_q, max_band),
            in_specs=[
                pl.BlockSpec((None, C, TK), x_index_map),
                pl.BlockSpec((None, 2, TQ), lambda b, q, k, lo, hi: (b, 0, q)),
            ],
            out_specs=pl.BlockSpec(
                (None, C, TQ), lambda b, q, k, lo, hi: (b, 0, q)),
            scratch_shapes=[
                pltpu.VMEM((C, TQ), jnp.float32),   # accumulator
                pltpu.VMEM((4, TQ), jnp.float32),   # 4 masked corner weights
                pltpu.VMEM((1, TQ), jnp.int32),     # top-left corner flat index
                pltpu.VMEM((TK, TQ), jnp.int32),    # hoisted source-row iota
            ]),
        compiler_params=pltpu.CompilerParams(
            dimension_semantics=("parallel", "parallel", "arbitrary")),
    )(kmin_flat, kmax_flat, x_cf, flow_cf)

    return out_cf.reshape(B, C, H, W)


def _reference_warp(x, flow):
    """Pure-JAX reference of F.grid_sample(bilinear, zeros, align_corners=True)."""
    B, C, H, W = x.shape
    gy, gx = jnp.meshgrid(jnp.arange(H, dtype=x.dtype),
                          jnp.arange(W, dtype=x.dtype), indexing="ij")
    sx = gx[None] + flow[:, 0]
    sy = gy[None] + flow[:, 1]
    x0 = jnp.floor(sx)
    y0 = jnp.floor(sy)
    x1 = x0 + 1.0
    y1 = y0 + 1.0
    wx1 = sx - x0
    wx0 = 1.0 - wx1
    wy1 = sy - y0
    wy0 = 1.0 - wy1

    def gather(cx, cy):
        valid = ((cx >= 0) & (cx <= W - 1) & (cy >= 0) & (cy <= H - 1))
        xi = jnp.clip(cx, 0, W - 1).astype(jnp.int32)
        yi = jnp.clip(cy, 0, H - 1).astype(jnp.int32)
        vals = jax.vmap(lambda xb, yb, xib: xb[:, yb, xib])(x, yi, xi)
        return vals * valid[:, None].astype(x.dtype)

    return (gather(x0, y0) * (wy0 * wx0)[:, None] +
            gather(x1, y0) * (wy0 * wx1)[:, None] +
            gather(x0, y1) * (wy1 * wx0)[:, None] +
            gather(x1, y1) * (wy1 * wx1)[:, None])


if __name__ == "__main__":
    key = jax.random.PRNGKey(0)
    kx, kf = jax.random.split(key)

    B, C, H, W = 2, 4, 16, 16
    x = jax.random.normal(kx, (B, C, H, W), dtype=jnp.float32)
    flow = jax.random.normal(kf, (B, 2, H, W), dtype=jnp.float32) * 2.0

    ref = _reference_warp(x, flow)

    # 1) f32 compute, single (q, k) tile: exact path.
    out_f32 = jax.block_until_ready(
        warping_layer(x, flow, compute_dtype=jnp.float32))
    assert out_f32.shape == (B, C, H, W)
    err = float(jnp.max(jnp.abs(out_f32 - ref)))
    assert err < 1e-4, err

    # 2) f32 compute, forced 2x2 (q, k) tiling: exercises the band-limited
    #    k axis, K accumulation and the cached per-q-tile weights / iota.
    out_tiled = jax.block_until_ready(
        warping_layer(x, flow, tq=128, tk=128, compute_dtype=jnp.float32))
    err = float(jnp.max(jnp.abs(out_tiled - ref)))
    assert err < 1e-4, err

    # 3) Large constant flow: q-tiles get different band widths, exercising
    #    the out-of-band skip + DMA-elision path (band shorter than max_band).
    flow_c = jnp.zeros((B, 2, H, W), jnp.float32).at[:, 1].set(5.5)
    ref_c = _reference_warp(x, flow_c)
    out_c = jax.block_until_ready(
        warping_layer(x, flow_c, tq=128, tk=128, compute_dtype=jnp.float32))
    err = float(jnp.max(jnp.abs(out_c - ref_c)))
    assert err < 1e-4, err

    # 4) Boundary flow (regression for row-wrap aliasing of idx+1 / idx+W+1):
    #    pushes samples onto/over the right and top image edges.
    flow_b = (jnp.zeros((B, 2, H, W), jnp.float32)
              .at[:, 0].set(0.75).at[:, 1].set(-0.4))
    ref_b = _reference_warp(x, flow_b)
    out_b = jax.block_until_ready(
        warping_layer(x, flow_b, tq=128, tk=128, compute_dtype=jnp.float32))
    err = float(jnp.max(jnp.abs(out_b - ref_b)))
    assert err < 1e-4, err

    # 5) Default bf16 MXU path (perf configuration), tiled.
    out_bf16 = jax.block_until_ready(
        warping_layer(x, flow, tq=128, tk=128))
    err = float(jnp.max(jnp.abs(out_bf16 - ref)))
    assert err < 5e-2, err

    print("KERNEL_OK")
</pallas_src>

<mosaic_0001>
module attributes {stable_mosaic.version = 11 : i64} {
  func.func @_warp_kernel(%arg0: i32, %arg1: i32, %arg2: i32, %arg3: memref<2xi32, #tpu.memory_space<smem>>, %arg4: memref<2xi32, #tpu.memory_space<smem>>, %arg5: memref<1x4x256xf32, #tpu.memory_space<vmem>>, %arg6: memref<1x2x256xf32, #tpu.memory_space<vmem>>, %arg7: memref<1x4x256xf32, #tpu.memory_space<vmem>>, %arg8: memref<4x256xf32, #tpu.memory_space<vmem>>, %arg9: memref<4x256xf32, #tpu.memory_space<vmem>>, %arg10: memref<1x256xi32, #tpu.memory_space<vmem>>, %arg11: memref<256x256xi32, #tpu.memory_space<vmem>>) attributes {dimension_semantics = [#tpu.dimension_semantics<parallel>, #tpu.dimension_semantics<parallel>, #tpu.dimension_semantics<arbitrary>], iteration_bounds = array<i64: 2, 1, 1>, scalar_prefetch = 2 : i64, scratch_operands = 4 : i64, tpu.core_type = #tpu.core_type<tc>, window_params = [{transform_indices = @transform_0, window_bounds = array<i64: 1, 4, 256>}, {transform_indices = @transform_1, window_bounds = array<i64: 1, 2, 256>}, {transform_indices = @transform_2, window_bounds = array<i64: 1, 4, 256>}]} {
    %c1_i32 = arith.constant 1 : i32
    %0 = arith.muli %arg0, %c1_i32 : i32
    %1 = arith.addi %0, %arg1 : i32
    %c0_i32 = arith.constant 0 : i32
    %2 = arith.cmpi eq, %arg2, %c0_i32 : i32
    %3 = arith.extui %2 : i1 to i32
    %c0_i32_0 = arith.constant 0 : i32
    %4 = arith.cmpi ne, %3, %c0_i32_0 : i32
    scf.if %4 {
      %cst = arith.constant 0.000000e+00 : f32
      %16 = vector.broadcast %cst : f32 to vector<4x256xf32>
      %c0 = arith.constant 0 : index
      %c0_4 = arith.constant 0 : index
      %17 = vector.load %arg8[%c0, %c0_4] : memref<4x256xf32, #tpu.memory_space<vmem>>, vector<4x256xf32>
      tpu.vector_store %arg8[%c0, %c0_4], %16 {strides = array<i32>} : memref<4x256xf32, #tpu.memory_space<vmem>>, vector<4x256xf32>,
      %18 = tpu.iota {dimensions = array<i32: 0>} : vector<256x256xi32>
      %c0_5 = arith.constant 0 : index
      %c0_6 = arith.constant 0 : index
      %19 = vector.load %arg11[%c0_5, %c0_6] : memref<256x256xi32, #tpu.memory_space<vmem>>, vector<256x256xi32>
      tpu.vector_store %arg11[%c0_5, %c0_6], %18 {strides = array<i32>} : memref<256x256xi32, #tpu.memory_space<vmem>>, vector<256x256xi32>,
      %c256_i32 = arith.constant 256 : i32
      %20 = arith.muli %arg1, %c256_i32 : i32
      %21 = tpu.iota {dimensions = array<i32: 1>} : vector<1x256xi32>
      %22 = vector.broadcast %20 : i32 to vector<1x256xi32>
      %23 = arith.addi %22, %21 : vector<1x256xi32>
      %24 = arith.sitofp %23 : vector<1x256xi32> to vector<1x256xf32>
      %cst_7 = arith.constant 1.600000e+01 : f32
      %25 = vector.broadcast %cst_7 : f32 to vector<1x256xf32>
      %26 = arith.divf %24, %25 : vector<1x256xf32>
      %27 = math.floor %26 : vector<1x256xf32>
      %cst_8 = arith.constant 1.600000e+01 : f32
      %28 = vector.broadcast %cst_8 : f32 to vector<1x256xf32>
      %29 = arith.mulf %27, %28 : vector<1x256xf32>
      %30 = arith.subf %24, %29 : vector<1x256xf32>
      %c0_9 = arith.constant 0 : index
      %c0_10 = arith.constant 0 : index
      %c0_11 = arith.constant 0 : index
      %31 = vector.load %arg6[%c0_9, %c0_10, %c0_11] : memref<1x2x256xf32, #tpu.memory_space<vmem>>, vector<1x1x256xf32>
      %32 = vector.shape_cast %31 : vector<1x1x256xf32> to vector<1x256xf32>
      %c0_12 = arith.constant 0 : index
      %c1 = arith.constant 1 : index
      %c0_13 = arith.constant 0 : index
      %33 = vector.load %arg6[%c0_12, %c1, %c0_13] : memref<1x2x256xf32, #tpu.memory_space<vmem>>, vector<1x1x256xf32>
      %34 = vector.shape_cast %33 : vector<1x1x256xf32> to vector<1x256xf32>
      %35 = arith.addf %30, %32 : vector<1x256xf32>
      %36 = arith.addf %27, %34 : vector<1x256xf32>
      %37 = math.floor %35 : vector<1x256xf32>
      %38 = math.floor %36 : vector<1x256xf32>
      %39 = arith.subf %35, %37 : vector<1x256xf32>
      %cst_14 = arith.constant 1.000000e+00 : f32
      %40 = vector.broadcast %cst_14 : f32 to vector<1x256xf32>
      %41 = arith.subf %40, %39 : vector<1x256xf32>
      %42 = arith.subf %36, %38 : vector<1x256xf32>
      %cst_15 = arith.constant 1.000000e+00 : f32
      %43 = vector.broadcast %cst_15 : f32 to vector<1x256xf32>
      %44 = arith.subf %43, %42 : vector<1x256xf32>
      %45 = arith.fptosi %37 : vector<1x256xf32> to vector<1x256xi32>
      %46 = arith.fptosi %38 : vector<1x256xf32> to vector<1x256xi32>
      %c0_i32_16 = arith.constant 0 : i32
      %47 = vector.broadcast %c0_i32_16 : i32 to vector<1x256xi32>
      %48 = arith.cmpi sge, %45, %47 : vector<1x256xi32>
      %c15_i32 = arith.constant 15 : i32
      %49 = vector.broadcast %c15_i32 : i32 to vector<1x256xi32>
      %50 = arith.cmpi sle, %45, %49 : vector<1x256xi32>
      %51 = arith.andi %48, %50 : vector<1x256xi1>
      %c1_i32_17 = arith.constant 1 : i32
      %52 = vector.broadcast %c1_i32_17 : i32 to vector<1x256xi32>
      %53 = arith.addi %45, %52 : vector<1x256xi32>
      %c0_i32_18 = arith.constant 0 : i32
      %54 = vector.broadcast %c0_i32_18 : i32 to vector<1x256xi32>
      %55 = arith.cmpi sge, %53, %54 : vector<1x256xi32>
      %c1_i32_19 = arith.constant 1 : i32
      %56 = vector.broadcast %c1_i32_19 : i32 to vector<1x256xi32>
      %57 = arith.addi %45, %56 : vector<1x256xi32>
      %c15_i32_20 = arith.constant 15 : i32
      %58 = vector.broadcast %c15_i32_20 : i32 to vector<1x256xi32>
      %59 = arith.cmpi sle, %57, %58 : vector<1x256xi32>
      %60 = arith.andi %55, %59 : vector<1x256xi1>
      %c0_i32_21 = arith.constant 0 : i32
      %61 = vector.broadcast %c0_i32_21 : i32 to vector<1x256xi32>
      %62 = arith.cmpi sge, %46, %61 : vector<1x256xi32>
      %c15_i32_22 = arith.constant 15 : i32
      %63 = vector.broadcast %c15_i32_22 : i32 to vector<1x256xi32>
      %64 = arith.cmpi sle, %46, %63 : vector<1x256xi32>
      %65 = arith.andi %62, %64 : vector<1x256xi1>
      %c1_i32_23 = arith.constant 1 : i32
      %66 = vector.broadcast %c1_i32_23 : i32 to vector<1x256xi32>
      %67 = arith.addi %46, %66 : vector<1x256xi32>
      %c0_i32_24 = arith.constant 0 : i32
      %68 = vector.broadcast %c0_i32_24 : i32 to vector<1x256xi32>
      %69 = arith.cmpi sge, %67, %68 : vector<1x256xi32>
      %c1_i32_25 = arith.constant 1 : i32
      %70 = vector.broadcast %c1_i32_25 : i32 to vector<1x256xi32>
      %71 = arith.addi %46, %70 : vector<1x256xi32>
      %c15_i32_26 = arith.constant 15 : i32
      %72 = vector.broadcast %c15_i32_26 : i32 to vector<1x256xi32>
      %73 = arith.cmpi sle, %71, %72 : vector<1x256xi32>
      %74 = arith.andi %69, %73 : vector<1x256xi1>
      %cst_27 = arith.constant 0.000000e+00 : f32
      %75 = vector.broadcast %cst_27 : f32 to vector<1x256xf32>
      %76 = arith.andi %65, %51 : vector<1x256xi1>
      %77 = arith.mulf %44, %41 : vector<1x256xf32>
      %78 = arith.select %76, %77, %75 : vector<1x256xi1>, vector<1x256xf32>
      %c0_28 = arith.constant 0 : index
      %c0_29 = arith.constant 0 : index
      %79 = vector.load %arg9[%c0_28, %c0_29] : memref<4x256xf32, #tpu.memory_space<vmem>>, vector<1x256xf32>
      tpu.vector_store %arg9[%c0_28, %c0_29], %78 {strides = array<i32>} : memref<4x256xf32, #tpu.memory_space<vmem>>, vector<1x256xf32>,
      %80 = arith.andi %65, %60 : vector<1x256xi1>
      %81 = arith.mulf %44, %39 : vector<1x256xf32>
      %82 = arith.select %80, %81, %75 : vector<1x256xi1>, vector<1x256xf32>
      %c1_30 = arith.constant 1 : index
      %c0_31 = arith.constant 0 : index
      %83 = vector.load %arg9[%c1_30, %c0_31] : memref<4x256xf32, #tpu.memory_space<vmem>>, vector<1x256xf32>
      tpu.vector_store %arg9[%c1_30, %c0_31], %82 {strides = array<i32>} : memref<4x256xf32, #tpu.memory_space<vmem>>, vector<1x256xf32>,
      %84 = arith.andi %74, %51 : vector<1x256xi1>
      %85 = arith.mulf %42, %41 : vector<1x256xf32>
      %86 = arith.select %84, %85, %75 : vector<1x256xi1>, vector<1x256xf32>
      %c2 = arith.constant 2 : index
      %c0_32 = arith.constant 0 : index
      %87 = vector.load %arg9[%c2, %c0_32] : memref<4x256xf32, #tpu.memory_space<vmem>>, vector<1x256xf32>
      tpu.vector_store %arg9[%c2, %c0_32], %86 {strides = array<i32>} : memref<4x256xf32, #tpu.memory_space<vmem>>, vector<1x256xf32>,
      %88 = arith.andi %74, %60 : vector<1x256xi1>
      %89 = arith.mulf %42, %39 : vector<1x256xf32>
      %90 = arith.select %88, %89, %75 : vector<1x256xi1>, vector<1x256xf32>
      %c3 = arith.constant 3 : index
      %c0_33 = arith.constant 0 : index
      %91 = vector.load %arg9[%c3, %c0_33] : memref<4x256xf32, #tpu.memory_space<vmem>>, vector<1x256xf32>
      tpu.vector_store %arg9[%c3, %c0_33], %90 {strides = array<i32>} : memref<4x256xf32, #tpu.memory_space<vmem>>, vector<1x256xf32>,
      %c16_i32 = arith.constant 16 : i32
      %92 = vector.broadcast %c16_i32 : i32 to vector<1x256xi32>
      %93 = arith.muli %46, %92 : vector<1x256xi32>
      %94 = arith.addi %93, %45 : vector<1x256xi32>
      %c0_34 = arith.constant 0 : index
      %c0_35 = arith.constant 0 : index
      %95 = vector.load %arg10[%c0_34, %c0_35] : memref<1x256xi32, #tpu.memory_space<vmem>>, vector<1x256xi32>
      tpu.vector_store %arg10[%c0_34, %c0_35], %94 {strides = array<i32>} : memref<1x256xi32, #tpu.memory_space<vmem>>, vector<1x256xi32>,
    } else {
    }
    %5 = arith.index_cast %1 : i32 to index
    %6 = memref.load %arg4[%5] : memref<2xi32, #tpu.memory_space<smem>>
    %7 = arith.index_cast %1 : i32 to index
    %8 = memref.load %arg3[%7] : memref<2xi32, #tpu.memory_space<smem>>
    %9 = arith.subi %6, %8 : i32
    %10 = arith.cmpi sle, %arg2, %9 : i32
    %11 = arith.extui %10 : i1 to i32
    %c0_i32_1 = arith.constant 0 : i32
    %12 = arith.cmpi ne, %11, %c0_i32_1 : i32
    scf.if %12 {
      %16 = arith.index_cast %1 : i32 to index
      %17 = memref.load %arg3[%16] : memref<2xi32, #tpu.memory_space<smem>>
      %18 = arith.addi %17, %arg2 : i32
      %c0 = arith.constant 0 : index
      %c0_4 = arith.constant 0 : index
      %19 = vector.load %arg10[%c0, %c0_4] : memref<1x256xi32, #tpu.memory_space<vmem>>, vector<1x256xi32>
      %c256_i32 = arith.constant 256 : i32
      %20 = arith.muli %18, %c256_i32 : i32
      %21 = vector.broadcast %20 : i32 to vector<1x256xi32>
      %22 = arith.subi %19, %21 : vector<1x256xi32>
      %c0_5 = arith.constant 0 : index
      %c0_6 = arith.constant 0 : index
      %23 = vector.load %arg11[%c0_5, %c0_6] : memref<256x256xi32, #tpu.memory_space<vmem>>, vector<256x256xi32>
      %c0_7 = arith.constant 0 : index
      %c0_8 = arith.constant 0 : index
      %24 = vector.load %arg9[%c0_7, %c0_8] : memref<4x256xf32, #tpu.memory_space<vmem>>, vector<1x256xf32>
      %c1 = arith.constant 1 : index
      %c0_9 = arith.constant 0 : index
      %25 = vector.load %arg9[%c1, %c0_9] : memref<4x256xf32, #tpu.memory_space<vmem>>, vector<1x256xf32>
      %c2 = arith.constant 2 : index
      %c0_10 = arith.constant 0 : index
      %26 = vector.load %arg9[%c2, %c0_10] : memref<4x256xf32, #tpu.memory_space<vmem>>, vector<1x256xf32>
      %c3 = arith.constant 3 : index
      %c0_11 = arith.constant 0 : index
      %27 = vector.load %arg9[%c3, %c0_11] : memref<4x256xf32, #tpu.memory_space<vmem>>, vector<1x256xf32>
      %28 = vector.broadcast %22 : vector<1x256xi32> to vector<256x256xi32>
      %29 = arith.cmpi eq, %23, %28 : vector<256x256xi32>
      %c1_i32_12 = arith.constant 1 : i32
      %30 = vector.broadcast %c1_i32_12 : i32 to vector<1x256xi32>
      %31 = arith.addi %22, %30 : vector<1x256xi32>
      %32 = vector.broadcast %31 : vector<1x256xi32> to vector<256x256xi32>
      %33 = arith.cmpi eq, %23, %32 : vector<256x256xi32>
      %c16_i32 = arith.constant 16 : i32
      %34 = vector.broadcast %c16_i32 : i32 to vector<1x256xi32>
      %35 = arith.addi %22, %34 : vector<1x256xi32>
      %36 = vector.broadcast %35 : vector<1x256xi32> to vector<256x256xi32>
      %37 = arith.cmpi eq, %23, %36 : vector<256x256xi32>
      %c17_i32 = arith.constant 17 : i32
      %38 = vector.broadcast %c17_i32 : i32 to vector<1x256xi32>
      %39 = arith.addi %22, %38 : vector<1x256xi32>
      %40 = vector.broadcast %39 : vector<1x256xi32> to vector<256x256xi32>
      %41 = arith.cmpi eq, %23, %40 : vector<256x256xi32>
      %cst = arith.constant 0.000000e+00 : f32
      %42 = vector.shape_cast %27 : vector<1x256xf32> to vector<1x256xf32>
      %43 = vector.broadcast %42 : vector<1x256xf32> to vector<256x256xf32>
      %44 = vector.broadcast %cst : f32 to vector<256x256xf32>
      %45 = arith.select %41, %43, %44 : vector<256x256xi1>, vector<256x256xf32>
      %46 = vector.shape_cast %26 : vector<1x256xf32> to vector<1x256xf32>
      %47 = vector.broadcast %46 : vector<1x256xf32> to vector<256x256xf32>
      %48 = arith.select %37, %47, %45 : vector<256x256xi1>, vector<256x256xf32>
      %49 = vector.shape_cast %25 : vector<1x256xf32> to vector<1x256xf32>
      %50 = vector.broadcast %49 : vector<1x256xf32> to vector<256x256xf32>
      %51 = arith.select %33, %50, %48 : vector<256x256xi1>, vector<256x256xf32>
      %52 = vector.shape_cast %24 : vector<1x256xf32> to vector<1x256xf32>
      %53 = vector.broadcast %52 : vector<1x256xf32> to vector<256x256xf32>
      %54 = arith.select %29, %53, %51 : vector<256x256xi1>, vector<256x256xf32>
      %c0_13 = arith.constant 0 : index
      %c0_14 = arith.constant 0 : index
      %55 = vector.load %arg8[%c0_13, %c0_14] : memref<4x256xf32, #tpu.memory_space<vmem>>, vector<4x256xf32>
      %c0_15 = arith.constant 0 : index
      %c0_16 = arith.constant 0 : index
      %c0_17 = arith.constant 0 : index
      %56 = vector.load %arg5[%c0_15, %c0_16, %c0_17] : memref<1x4x256xf32, #tpu.memory_space<vmem>>, vector<1x4x256xf32>
      %57 = vector.shape_cast %56 : vector<1x4x256xf32> to vector<4x256xf32>
      %cst_18 = arith.constant dense<0.000000e+00> : vector<4x256xf32>
      %58 = tpu.matmul %57, %54, %cst_18 {dimension_numbers = #tpu.dot_dimension_numbers<[1], [0], [0], [1], [0, 0, 1, 1], [], []>} : vector<4x256xf32>, vector<256x256xf32>, vector<4x256xf32> -> vector<4x256xf32>
      %59 = arith.addf %55, %58 : vector<4x256xf32>
      %c0_19 = arith.constant 0 : index
      %c0_20 = arith.constant 0 : index
      %60 = vector.load %arg8[%c0_19, %c0_20] : memref<4x256xf32, #tpu.memory_space<vmem>>, vector<4x256xf32>
      tpu.vector_store %arg8[%c0_19, %c0_20], %59 {strides = array<i32>} : memref<4x256xf32, #tpu.memory_space<vmem>>, vector<4x256xf32>,
    } else {
    }
    %c0_i32_2 = arith.constant 0 : i32
    %13 = arith.cmpi eq, %arg2, %c0_i32_2 : i32
    %14 = arith.extui %13 : i1 to i32
    %c0_i32_3 = arith.constant 0 : i32
    %15 = arith.cmpi ne, %14, %c0_i32_3 : i32
    scf.if %15 {
      %c0 = arith.constant 0 : index
      %c0_4 = arith.constant 0 : index
      %16 = vector.load %arg8[%c0, %c0_4] : memref<4x256xf32, #tpu.memory_space<vmem>>, vector<4x256xf32>
      %c0_5 = arith.constant 0 : index
      %c0_6 = arith.constant 0 : index
      %c0_7 = arith.constant 0 : index
      %17 = vector.load %arg7[%c0_5, %c0_6, %c0_7] : memref<1x4x256xf32, #tpu.memory_space<vmem>>, vector<1x4x256xf32>
      %18 = vector.shape_cast %17 : vector<1x4x256xf32> to vector<4x256xf32>
      %19 = vector.shape_cast %16 : vector<4x256xf32> to vector<1x4x256xf32>
      tpu.vector_store %arg7[%c0_5, %c0_6, %c0_7], %19 {strides = array<i32>} : memref<1x4x256xf32, #tpu.memory_space<vmem>>, vector<1x4x256xf32>,
    } else {
    }
    return
  }
  func.func @transform_0(%arg0: i32, %arg1: i32, %arg2: i32, %arg3: memref<2xi32, #tpu.memory_space<smem>>, %arg4: memref<2xi32, #tpu.memory_space<smem>>) -> (i32, i32, i32) {
    %c1_i32 = arith.constant 1 : i32
    %0 = arith.muli %arg0, %c1_i32 : i32
    %1 = arith.addi %0, %arg1 : i32
    %2 = arith.index_cast %1 : i32 to index
    %3 = memref.load %arg3[%2] : memref<2xi32, #tpu.memory_space<smem>>
    %4 = arith.addi %3, %arg2 : i32
    %5 = arith.index_cast %1 : i32 to index
    %6 = memref.load %arg4[%5] : memref<2xi32, #tpu.memory_space<smem>>
    %7 = arith.minsi %4, %6 : i32
    %c0_i32 = arith.constant 0 : i32
    %c0_i32_0 = arith.constant 0 : i32
    return %arg0, %c0_i32, %7 : i32, i32, i32
  }
  func.func @transform_1(%arg0: i32, %arg1: i32, %arg2: i32, %arg3: memref<2xi32, #tpu.memory_space<smem>>, %arg4: memref<2xi32, #tpu.memory_space<smem>>) -> (i32, i32, i32) {
    %c0_i32 = arith.constant 0 : i32
    %c0_i32_0 = arith.constant 0 : i32
    return %arg0, %c0_i32, %arg1 : i32, i32, i32
  }
  func.func @transform_2(%arg0: i32, %arg1: i32, %arg2: i32, %arg3: memref<2xi32, #tpu.memory_space<smem>>, %arg4: memref<2xi32, #tpu.memory_space<smem>>) -> (i32, i32, i32) {
    %c0_i32 = arith.constant 0 : i32
    %c0_i32_0 = arith.constant 0 : i32
    return %arg0, %c0_i32, %arg1 : i32, i32, i32
  }
}

</mosaic_0001>

<bundles_post_ra>
// kernel: tpu_custom_call.1
= control target key start
LH: loop header
LB: loop body
LE: loop exit
PB: predicated region body
PF: predicated region fallthrough
CT: control target
= control target key end

     0   :  { %s3064_s0 = inlined_call_operand.hbm [shape: s32[2], index: 0, kind: input, shape index: {}]   ;;  %s3065_s2 = inlined_call_operand.hbm [shape: f32[2,4,256], index: 2, kind: input, shape index: {}]   ;;  %s3066_s3 = inlined_call_operand.vmem [shape: f32[2,2,256], index: 3, kind: input, shape index: {}]   ;;  %s3067_s4 = inlined_call_operand.hbm [shape: f32[2,4,256], index: 4, kind: output, shape index: {}]   ;;  %s3068_s1 = inlined_call_operand.vmem [shape: s32[2], index: 1, kind: input, shape index: {}]  }
   0x1   :  { %s1657_s17 = scalar_lea.hbm %s3064_s0, 16 }
   0x2   :  { %p1658_p0 = scmp.ne.s32.totalorder %s3064_s0, %s1657_s17  ;;  %p1661_p1 = scmp.lt.u32.totalorder %s1657_s17, %s3064_s0 }
   0x4   :  { %p1663_p2 = pnand %p1661_p1, %p1658_p0 }
   0x6   :  { %1666 = shalt.err (!%p1663_p2)  }
   0x7   :  { %s1819_s22 = smov [#allocation7]   ;;  %s11_s27 = sshll.u32 %s3068_s1, 4  ;;  %s12_s27 = int_to_ptr.vmem [resolvable:$true] %s11_s27 }
   0x8   :  { %10 = dma.hbm_to_smem %s3064_s0, 16, %s1819_s22, [#allocation6] }
   0x9   :  { %s1667_s28 = scalar_lea.vmem %s12_s27, 16  ;;  %p1672_p4 = scmp.lt.s32.totalorder %s12_s27, %s12_s27 }
   0xa   :  { %p1668_p3 = scmp.ne.s32.totalorder %s12_s27, %s1667_s28  ;;  %p1673_p5 = scmp.lt.s32.totalorder %s1667_s28, %s1667_s28 }
   0xc   :  { %p1674_p6 = por %p1673_p5, %p1672_p4 }
   0xe   :  { %p1675_p7 = pnand %p1674_p6, %p1668_p3 }
  0x10   :  { %1678 = shalt.err (!%p1675_p7)  }
  0x11   :  { %s1820_s29 = smov [#allocation8]  }
  0x12   :  { %14 = dma.vmem_to_smem %s12_s27, 16, %s1820_s29, [#allocation6] }
  0x13   :  { %1773 = dma.done.wait [#allocation6], 32 }
  0x14   :  { %1774 = vsyncadd [#allocation6], 4294967264 }
  0x15   :  { %16 = sfence }
  0x16   :  { %17 = vsyncpa [#allocation10], 0 }
  0x17   :  { %19 = vsyncpa [#allocation10 + $0x1], 0 }
  0x18   :  { %20 = vsyncpa [#allocation11], 0 }
  0x19   :  { %22 = vsyncpa [#allocation11 + $0x1], 0  ;;  %s1865_s0 = smov 0   ;;  %s1867_s1 = smov 0  }
  0x1a   :  { %s1869_s30 = smov 0   ;;  %s1871_s5 = smov 0  }
  0x1b   :  { %s1873_s6 = smov 0   ;;  %s1875_s7 = smov 0  }
  0x1c   :  { %s1877_s8 = smov 0   ;;  %s1879_s9 = smov 0  }
  0x1d   :  { %s1881_s10 = smov 0  }
  0x1e LB: > { %3073 = sst [smem:[#allocation20_spill]] %s1805_s7  ;;  %s1462_s11 = sadd.s32 4294967295, %s1817_s10   ;;  %s1817_s10 = sphi %s1881_s10, %s28_s10   ;;  %s1813_s9 = sphi %s1879_s9, %s3112_s9   ;;  %s1809_s8 = sphi %s1877_s8, %s3111_s8   ;;  %s1805_s7 = sphi %s1875_s7, %s3104_s7   ;;  %s1801_s6 = sphi %s1873_s6, %s3110_s6   ;;  %s1797_s5 = sphi %s1871_s5, %s3109_s5   ;;  %s1793_s30 = sphi %s1869_s30, %s3108_s30   ;;  %s1789_s1 = sphi %s1867_s1, %s3107_s1   ;;  %s1785_s0 = sphi %s1865_s0, %s3106_s0  }
  0x1f   : > { %s47_s12 = sadd.s32 1, %s1813_s9  ;;  %s52_s13 = sld [smem:[#allocation7 + %s1813_s9]] }
  0x20   : > { %p49_p8 = scmp.ge.s32.totalorder %s47_s12, 2  ;;  %s54_s14 = sld [smem:[#allocation8 + %s1813_s9]] }
  0x21   : > { %s1463_s15 = sadd.s32 4294967294, %s1817_s10   ;;  %s68_s16 = sadd.s32 1, %s1805_s7 }
  0x22   : > { %s3114_s12 = smov (%p49_p8, %s47_s12), 0  ;;  %p75_p9 = scmp.ne.s32.totalorder %s1805_s7, %s1801_s6 }
  0x23   : > { %3074 = sst [smem:[#allocation21_spill]] %s3114_s12  ;;  %p76_p10 = scmp.eq.s32.totalorder %s1817_s10, 0 }
  0x24   : > { %s58_s17 = sld [smem:[#allocation7 + %s3114_s12]]  ;;  %s63_s19 = ssub.s32 %s1813_s9, %s3114_s12 }
  0x25   : > { %s60_s18 = sld [smem:[#allocation8 + %s3114_s12]]  ;;  %p81_p11 = scmp.ne.s32.totalorder %s1801_s6, %s1797_s5 }
  0x26   : > { %p55_p12 = scmp.lt.s32.totalorder %s52_s13, %s54_s14  ;;  %p82_p13 = scmp.eq.s32.totalorder %s1462_s11, 0 }
  0x27   : > { %p122_p0 = scmp.eq.s32.totalorder %s63_s19, 0  ;;  %s124_s20 = sadd.s32 1, %s1793_s30 }
  0x28   : > { %s3116_s13 = smov (!%p55_p12, %s52_s13), %s54_s14  ;;  %p1925_p1 = por %p82_p13, %p81_p11 }
  0x29   : > { %p134_p2 = scmp.ne.s32.totalorder %s1793_s30, %s1789_s1  ;;  %p135_p4 = scmp.eq.s32.totalorder %s1462_s11, 1 }
  0x2a   : > { %s3075_s21 = scalar_select %p1925_p1, 1, 0 }
  0x2b   : > { %p61_p3 = scmp.lt.s32.totalorder %s58_s17, %s60_s18  ;;  %p1934_p5 = por %p135_p4, %p134_p2 }
  0x2c   : > { %s1932_s22 = scalar_select %p122_p0, %s1793_s30, %s124_s20  }
  0x2d   : > { %s3118_s17 = smov (!%p61_p3, %s58_s17), %s60_s18  ;;  %p140_p6 = scmp.ne.s32.totalorder %s1789_s1, %s1785_s0 }
  0x2e   : > { %s3076_s23 = scalar_select %p1934_p5, 1, 0 }
  0x2f   : > { %s64_s24 = ssub.s32 %s3116_s13, %s3118_s17  ;;  %p141_p7 = scmp.eq.s32.totalorder %s1463_s15, 1 }
  0x30   : > { %s65_s25 = sor.u32 %s64_s24, %s63_s19  ;;  %p77_p13 = por %p76_p10, %p75_p9 }
  0x31   : > { %p66_p11 = scmp.eq.s32.totalorder %s65_s25, 0  ;;  %p1941_p12 = por %p141_p7, %p140_p6 }
  0x32   : > { %p1578_p0 = scmp.lt.s32.totalorder %s1817_s10, 2  ;;  %s161_s28 = sand.u32 1, %s1805_s7  }
  0x33   : > { %s3077_s26 = scalar_select %p1941_p12, 1, 0 }
  0x34   : > { %s1951_s27 = scalar_select %p66_p11, %s1805_s7, %s68_s16  }
  0x35   : > { %s1558_s29 = scalar_select %p77_p13, [#allocation7], [#allocation13] }
  0x36   : > { %3078 = sst [smem:[#allocation22_spill]] %s1951_s27  ;;  %s1466_s14 = sshll.u32 %s161_s28, 3 }
  0x37   : > { %s1559_s5 = scalar_select %p77_p13, %s1813_s9, 0 }
  0x38   : > { %s3120_s29 = smov (!%p1578_p0, %s1558_s29), [#allocation15]  ;;  %p1956_p2 = pnand %p1578_p0, %p77_p13 }
  0x39   : > { %s3122_s5 = smov (!%p1578_p0, %s1559_s5), 0  ;;  %p1470_p3 = scmp.ge.s32.totalorder %s1817_s10, 1 }
  0x3a   : > { %s1560_s11 = scalar_select %p77_p13, [#allocation8], [#allocation14] }
  0x3b   : > { %s167_s13 = sld [smem:[%s3120_s29 + %s3122_s5]]  ;;  %p199_p9 = scmp.lt.s32.totalorder %s1817_s10, 3 }
  0x3c   : > { %s3124_s11 = smov (!%p1578_p0, %s1560_s11), [#allocation16]  ;;  %s1468_s18 = sshll.u32 %s1813_s9, 1 }
  0x3d   : > { %s169_s17 = sld [smem:[%s3124_s11 + %s3122_s5]]  ;;  %p1962_p10 = pnand %p1470_p3, %p199_p9 }
  0x3e   : > { %s165_s19 = scalar_lea.vmem [#allocation9], %s1466_s14  ;;  %s162_s27 = scalar_lea.sflag [#allocation10], %s161_s28 }
  0x3f   : > { %s181_s20 = sshll.u32 %s165_s19, 4  ;;  %p1681_p7 = pneg %p1956_p2  ;;  %s1967_s20 = int_to_ptr.vmem [resolvable:$true] %s181_s20 }
  0x43   : > { %p170_p4 = scmp.lt.s32.totalorder %s167_s13, %s169_s17 }
  0x45   : > { %s3126_s13 = smov (!%p170_p4, %s167_s13), %s169_s17  ;;  %s1684_s17 = scalar_lea.hbm %s3065_s2, 256 }
  0x46   : > { %s1467_s24 = sshll.u32 %s3126_s13, 1 }
  0x47   : > { %s177_s25 = sadd.s32 %s1468_s18, %s1467_s24 }
  0x48   : > { %s1469_s29 = sshll.u32 %s177_s25, 6 }
  0x49   : > { %s1972_s11 = scalar_lea.hbm %s3065_s2, %s1469_s29 }
  0x4a   : > { %s1679_s7 = scalar_lea.hbm %s1972_s11, 128  ;;  %p1685_p0 = scmp.lt.u32.totalorder %s1972_s11, %s3065_s2 }
  0x4b   : > { %p1680_p6 = scmp.ne.s32.totalorder %s1972_s11, %s1679_s7  ;;  %p1686_p3 = scmp.lt.u32.totalorder %s1684_s17, %s1679_s7 }
  0x4c   : > { %p1688_p4 = scmp.lt.u32.totalorder %s1679_s7, %s1972_s11 }
  0x4d   : > { %p1682_p11 = pnand %p1681_p7, %p1680_p6  ;;  %p1687_p9 = por %p1686_p3, %p1685_p0 }
  0x4f   : > { %p1683_p13 = pneg %p1682_p11  ;;  %p1689_p8 = por %p1688_p4, %p1687_p9 }
  0x51   : > { %p1690_p12 = pnand %p1689_p8, %p1683_p13 }
  0x53   : > { %1693 = shalt.err (!%p1690_p12)
}
  0x54   : > { %s1694_s28 = scalar_lea.vmem %s1967_s20, 128  ;;  %s1821_s19 = smov [#allocation9]  }
  0x55   : > { %p1695_p6 = scmp.ne.s32.totalorder %s1967_s20, %s1694_s28  ;;  %s1699_s24 = sshll.u32 %s1821_s19, 4  ;;  %s1700_s24 = int_to_ptr.vmem [resolvable:$false] %s1699_s24 }
  0x56   : > { %s1701_s25 = scalar_lea.vmem %s1700_s24, 256  ;;  %p1702_p1 = scmp.lt.s32.totalorder %s1967_s20, %s1700_s24 }
  0x57   : > { %p1697_p11 = pnand %p1695_p6, %p1681_p7  ;;  %p1703_p0 = scmp.lt.s32.totalorder %s1701_s25, %s1694_s28 }
  0x59   : > { %p1698_p5 = pneg %p1697_p11  ;;  %p1704_p3 = por %p1703_p0, %p1702_p1 }
  0x5b   : > { %p1705_p9 = pnand %p1704_p3, %p1698_p5 }
  0x5d   : > { %1708 = shalt.err (!%p1705_p9)
}
  0x5e   : > { %1573 = dma.hbm_to_vmem [thread:$0]  (!%p1956_p2), %s1972_s11, 128, %s1967_s20, %s162_s27  }
  0x5f   : > { %203 = sbr.rel (%p1962_p10) target bundleno = 555 (0x22b), region = 28  ;;  %s205_s7 = sand.u32 (!%p1962_p10), 1, %s1801_s6  }
  0x60   : > { %s2002_s29 = sshll.u32 (!%p1962_p10), %s205_s7, 3  ;;  %s206_s5 = scalar_lea.sflag (!%p1962_p10), [#allocation10], %s205_s7 }
  0x61   : > { %s209_s13 = scalar_lea.vmem (!%p1962_p10), [#allocation9], %s2002_s29  ;;  %p3081_p8 = scmp.ne.s32.totalorder (!%p1962_p10), %s3075_s21, 0 }
  0x66   : > { %1776 = dma.done.wait (%p3081_p8), %s206_s5, 128  }
  0x67   : > { %1778 = vsyncadd (%p3081_p8), %s206_s5, 4294967168  ;;  %s236_s27 = sand.u32 1, %s1789_s1   ;;  %v263_v0 = vlaneseq  ;;  %p247_p1 = scmp.lt.s32.totalorder %s1809_s8, 1  ;;  %v1822_v1 = vmov 0.0  }
  0x68   : > { %s2012_s15 = sld [smem:[#allocation8 + %s1809_s8]]  ;;  %262 = vst [vmem:[#allocation2] sm:$0xff] %v1822_v1  ;;  %s2019_s20 = sshll.u32 %s236_s27, 3 }
  0x69   : > { %s2015_s16 = sld [smem:[#allocation7 + %s1809_s8]]  ;;  %v2022_v2 = vshrl.u32 %v263_v0, 7  ;;  %v2025_v3 = vand.u32 127, %v263_v0  ;;  %s238_s28 = scalar_lea.vmem [#allocation12], %s2019_s20 }
  0x6a   : > { %s2036_s21 = scalar_select %p247_p1, %s1809_s8, 1 }
  0x6b   : > { %296 = vst [vmem:[#allocation5] sm:$0xff] %v2022_v2  ;;  %297 = vst [vmem:[#allocation5 + $0x8] sm:$0xff] %v2022_v2  ;;  %v265_v4 = vadd.s32 8, %v2022_v2  ;;  %v266_v5 = vadd.s32 16, %v2022_v2  ;;  %v267_v6 = vadd.s32 24, %v2022_v2  ;;  %v268_v7 = vadd.s32 32, %v2022_v2 }
  0x6c   : > { %v269_v8 = vadd.s32 40, %v2022_v2  ;;  %v270_v9 = vadd.s32 48, %v2022_v2  ;;  %v271_v10 = vadd.s32 56, %v2022_v2  ;;  %v272_v11 = vadd.s32 64, %v2022_v2  ;;  %s1484_s11 = sshll.u32 %s2036_s21, 2 }
  0x6d   : > { %298 = vst [vmem:[#allocation5 + $0x10] sm:$0xff] %v265_v4  ;;  %299 = vst [vmem:[#allocation5 + $0x18] sm:$0xff] %v265_v4  ;;  %v273_v12 = vadd.s32 72, %v2022_v2  ;;  %v274_v13 = vadd.s32 80, %v2022_v2  ;;  %v275_v14 = vadd.s32 88, %v2022_v2  ;;  %v276_v15 = vadd.s32 96, %v2022_v2  ;;  %s2066_s18 = scalar_lea.vmem %s3066_s3, %s1484_s11 }
  0x6e   : > { %300 = vst [vmem:[#allocation5 + $0x20] sm:$0xff] %v266_v5  ;;  %301 = vst [vmem:[#allocation5 + $0x28] sm:$0xff] %v266_v5  ;;  %v277_v16 = vadd.s32 104, %v2022_v2  ;;  %v278_v17 = vadd.s32 112, %v2022_v2  ;;  %v279_v18 = vadd.s32 120, %v2022_v2  ;;  %v280_v19 = vadd.s32 128, %v2022_v2 }
  0x6f   : > { %302 = vst [vmem:[#allocation5 + $0x30] sm:$0xff] %v267_v6  ;;  %303 = vst [vmem:[#allocation5 + $0x38] sm:$0xff] %v267_v6  ;;  %s580_s14 = ssub.s32 %s2012_s15, %s2015_s16  ;;  %v281_v20 = vadd.s32 136, %v2022_v2  ;;  %v282_v21 = vadd.s32 144, %v2022_v2  ;;  %v283_v22 = vadd.s32 152, %v2022_v2  ;;  %v284_v23 = vadd.s32 160, %v2022_v2 }
  0x70   : > { %304 = vst [vmem:[#allocation5 + $0x40] sm:$0xff] %v268_v7  ;;  %305 = vst [vmem:[#allocation5 + $0x48] sm:$0xff] %v268_v7  ;;  %v285_v24 = vadd.s32 168, %v2022_v2  ;;  %v286_v25 = vadd.s32 176, %v2022_v2  ;;  %v287_v26 = vadd.s32 184, %v2022_v2  ;;  %v288_v27 = vadd.s32 192, %v2022_v2 }
  0x71   : > { %306 = vst [vmem:[#allocation5 + $0x50] sm:$0xff] %v269_v8  ;;  %307 = vst [vmem:[#allocation5 + $0x58] sm:$0xff] %v269_v8  ;;  %v289_v28 = vadd.s32 200, %v2022_v2  ;;  %v290_v29 = vadd.s32 208, %v2022_v2  ;;  %v291_v30 = vadd.s32 216, %v2022_v2  ;;  %v292_v31 = vadd.s32 224, %v2022_v2 }
  0x72   : > { %308 = vst [vmem:[#allocation5 + $0x60] sm:$0xff] %v270_v9  ;;  %309 = vst [vmem:[#allocation5 + $0x68] sm:$0xff] %v270_v9  ;;  %v293_v32 = vadd.s32 232, %v2022_v2  ;;  %v294_v33 = vadd.s32 240, %v2022_v2  ;;  %v295_v34 = vadd.s32 248, %v2022_v2  ;;  %v363_v35 = vadd.s32 128, %v2025_v3 }
  0x73   : > { %310 = vst [vmem:[#allocation5 + $0x70] sm:$0xff] %v271_v10  ;;  %311 = vst [vmem:[#allocation5 + $0x78] sm:$0xff] %v271_v10  ;;  %v367_v36 = vcvt.s32.f32 %v2025_v3  ;;  %v1475_v37 = vld [vmem:[%s2066_s18 + $0x1] ss:$2 sm:$0x3]  ;;  %v2079_v39 = vsub.s32 0, %v2022_v2 }
  0x74   : > { %312 = vst [vmem:[#allocation5 + $0x80] sm:$0xff] %v272_v11  ;;  %313 = vst [vmem:[#allocation5 + $0x88] sm:$0xff] %v272_v11  ;;  %v368_v38 = vcvt.s32.f32 %v363_v35  ;;  %v2082_v40 = vsub.s32 1, %v2022_v2  ;;  %v378_v43 = vld [vmem:[%s2066_s18] ss:$2 sm:$0x3] }
  0x75   : > { %314 = vst [vmem:[#allocation5 + $0x90] sm:$0xff] %v273_v12  ;;  %315 = vst [vmem:[#allocation5 + $0x98] sm:$0xff] %v273_v12  ;;  %v370_v41 = vmul.f32 0.0625, %v367_v36  ;;  %v398_v44 = vrot.slane %v1475_v37, %v2079_v39  ;;  %v385_v49 = vrot.slane %v378_v43, %v2079_v39  ;;  %v1823_v4 = vmov 1966171168   ;;  %p1477_p5 = scmp.lt.s32.totalorder %s580_s14, 0 }
  0x76   : > { %316 = vst [vmem:[#allocation5 + $0xa0] sm:$0xff] %v274_v13  ;;  %317 = vst [vmem:[#allocation5 + $0xa8] sm:$0xff] %v274_v13  ;;  %v371_v42 = vmul.f32 0.0625, %v368_v38  ;;  %v402_v46 = vrot.slane %v1475_v37, %v2082_v40  ;;  %v389_v52 = vrot.slane %v378_v43, %v2082_v40  ;;  %v461_v5 = vunpack.c.l.s4 %v1823_v4  ;;  %s585_s19 = sld [smem:[#allocation7 + %s1809_s8]] (!%p1477_p5) }
  0x77   : > { %318 = vst [vmem:[#allocation5 + $0xb0] sm:$0xff] %v275_v14  ;;  %319 = vst [vmem:[#allocation5 + $0xb8] sm:$0xff] %v275_v14  ;;  %v372_v45 = vfloor.f32 %v370_v41 }
  0x78   : > { %320 = vst [vmem:[#allocation5 + $0xc0] sm:$0xff] %v276_v15  ;;  %321 = vst [vmem:[#allocation5 + $0xc8] sm:$0xff] %v276_v15  ;;  %v373_v47 = vfloor.f32 %v371_v42 }
  0x79   : > { %322 = vst [vmem:[#allocation5 + $0xd0] sm:$0xff] %v277_v16  ;;  %323 = vst [vmem:[#allocation5 + $0xd8] sm:$0xff] %v277_v16  ;;  %v374_v48 = vmul.f32 16.0, %v372_v45  ;;  %v405_v50 = vadd.f32 %v398_v44, %v372_v45 }
  0x7a   : > { %324 = vst [vmem:[#allocation5 + $0xe0] sm:$0xff] %v278_v17  ;;  %325 = vst [vmem:[#allocation5 + $0xe8] sm:$0xff] %v278_v17  ;;  %v375_v51 = vmul.f32 16.0, %v373_v47  ;;  %v406_v53 = vadd.f32 %v402_v46, %v373_v47 }
  0x7b   : > { %326 = vst [vmem:[#allocation5 + $0xf0] sm:$0xff] %v279_v18  ;;  %327 = vst [vmem:[#allocation5 + $0xf8] sm:$0xff] %v279_v18  ;;  %v376_v54 = vsub.f32 %v367_v36, %v374_v48  ;;  %v409_v55 = vfloor.f32 %v405_v50 }
  0x7c   : > { %328 = vst [vmem:[#allocation5 + $0x100] sm:$0xff] %v280_v19  ;;  %329 = vst [vmem:[#allocation5 + $0x108] sm:$0xff] %v280_v19  ;;  %v377_v56 = vsub.f32 %v368_v38, %v375_v51  ;;  %v410_v57 = vfloor.f32 %v406_v53  ;;  %v462_v19 = vunpack.c.0.s8 %v461_v5  ;;  %s1478_s24 = sshll.u32 (!%p1477_p5), %s585_s19, 8  ;;  %v598_v38 = vld [vmem:[#allocation5 + $0x38] sm:$0xff] (!%p1477_p5) }
  0x7d   : > { %330 = vst [vmem:[#allocation5 + $0x110] sm:$0xff] %v281_v20  ;;  %331 = vst [vmem:[#allocation5 + $0x118] sm:$0xff] %v281_v20  ;;  %v392_v58 = vadd.f32 %v385_v49, %v376_v54  ;;  %v2089_v59 = vsub.f32 %v405_v50, %v409_v55  ;;  %v1554_v60 = vtrunc.f32 %v409_v55 }
  0x7e   : > { %332 = vst [vmem:[#allocation5 + $0x120] sm:$0xff] %v282_v21  ;;  %333 = vst [vmem:[#allocation5 + $0x128] sm:$0xff] %v282_v21  ;;  %v393_v61 = vadd.f32 %v389_v52, %v377_v56  ;;  %v2091_v62 = vsub.f32 %v406_v53, %v410_v57  ;;  %v1556_v63 = vtrunc.f32 %v410_v57 }
  0x7f   : > { %334 = vst [vmem:[#allocation5 + $0x130] sm:$0xff] %v283_v22  ;;  %335 = vst [vmem:[#allocation5 + $0x138] sm:$0xff] %v283_v22  ;;  %v407_v1 = vfloor.f32 %v392_v58  ;;  %v1555_v3 = vcvt.f32.s32 %v1554_v60  ;;  %v417_v7 = vsub.f32 1.0, %v2089_v59 }
  0x80   : > { %336 = vst [vmem:[#allocation5 + $0x140] sm:$0xff] %v284_v23  ;;  %337 = vst [vmem:[#allocation5 + $0x148] sm:$0xff] %v284_v23  ;;  %v408_v6 = vfloor.f32 %v393_v61  ;;  %v418_v8 = vsub.f32 1.0, %v2091_v62  ;;  %v1557_v9 = vcvt.f32.s32 %v1556_v63  ;;  %v594_v23 = vld [vmem:[#allocation5 + $0x18] sm:$0xff] (!%p1477_p5) }
  0x81   : > { %338 = vst [vmem:[#allocation5 + $0x150] sm:$0xff] %v285_v24  ;;  %339 = vst [vmem:[#allocation5 + $0x158] sm:$0xff] %v285_v24  ;;  %v411_v10 = vsub.f32 %v392_v58, %v407_v1  ;;  %v1550_v11 = vtrunc.f32 %v407_v1  ;;  %vm437_vm0 = vcmp.ge.s32.totalorder %v1555_v3, 0  ;;  %vm439_vm1 = vcmp.le.s32.totalorder %v1555_v3, 15 }
  0x82   : > { %340 = vst [vmem:[#allocation5 + $0x160] sm:$0xff] %v286_v25  ;;  %341 = vst [vmem:[#allocation5 + $0x168] sm:$0xff] %v286_v25  ;;  %v412_v12 = vsub.f32 %v393_v61, %v408_v6  ;;  %v1552_v13 = vtrunc.f32 %v408_v6  ;;  %vm438_vm2 = vcmp.ge.s32.totalorder %v1557_v9, 0  ;;  %vm440_vm3 = vcmp.le.s32.totalorder %v1557_v9, 15 }
  0x83   : > { %342 = vst [vmem:[#allocation5 + $0x170] sm:$0xff] %v287_v26  ;;  %343 = vst [vmem:[#allocation5 + $0x178] sm:$0xff] %v287_v26  ;;  %v413_v14 = vsub.f32 1.0, %v411_v10  ;;  %v1551_v15 = vcvt.f32.s32 %v1550_v11  ;;  %v558_v35 = vmul.u32 16, %v1555_v3  ;;  %v559_v36 = vmul.u32 16, %v1557_v9 }
  0x84   : > { %344 = vst [vmem:[#allocation5 + $0x180] sm:$0xff] %v288_v27  ;;  %345 = vst [vmem:[#allocation5 + $0x188] sm:$0xff] %v288_v27  ;;  %v414_v16 = vsub.f32 1.0, %v412_v12  ;;  %v1553_v17 = vcvt.f32.s32 %v1552_v13  ;;  %v443_v27 = vadd.s32 1, %v1555_v3  ;;  %v535_v53 = vmul.f32 %v2091_v62, %v412_v12 }
  0x85   : > { %346 = vst [vmem:[#allocation5 + $0x190] sm:$0xff] %v289_v28  ;;  %347 = vst [vmem:[#allocation5 + $0x198] sm:$0xff] %v289_v28  ;;  %vm423_vm5 = vcmp.ge.s32.totalorder %v1551_v15, 0  ;;  %vm425_vm6 = vcmp.le.s32.totalorder %v1551_v15, 15  ;;  %v453_v21 = vmul.f32 %v417_v7, %v413_v14  ;;  %v429_v22 = vadd.s32 1, %v1551_v15 }
  0x86   : > { %348 = vst [vmem:[#allocation5 + $0x1a0] sm:$0xff] %v290_v29  ;;  %349 = vst [vmem:[#allocation5 + $0x1a8] sm:$0xff] %v290_v29  ;;  %vm424_vm8 = vcmp.ge.s32.totalorder %v1553_v17, 0  ;;  %vm426_vm9 = vcmp.le.s32.totalorder %v1553_v17, 15  ;;  %v454_v24 = vmul.f32 %v418_v8, %v414_v16  ;;  %v430_v25 = vadd.s32 1, %v1553_v17 }
  0x87   : > { %350 = vst [vmem:[#allocation5 + $0x1b0] sm:$0xff] %v291_v30  ;;  %351 = vst [vmem:[#allocation5 + $0x1b8] sm:$0xff] %v291_v30  ;;  %vm431_vm12 = vcmp.ge.s32.totalorder %v429_v22, 0  ;;  %vm433_vm13 = vcmp.le.s32.totalorder %v429_v22, 15  ;;  %v444_v28 = vadd.s32 1, %v1557_v9  ;;  %v465_v30 = vsub.s32 %v462_v19, %v2022_v2  ;;  %v592_v22 = vld [vmem:[#allocation5 + $0x8] sm:$0xff] (!%p1477_p5) }
  0x88   : > { %352 = vst [vmem:[#allocation5 + $0x1c0] sm:$0xff] %v292_v31  ;;  %353 = vst [vmem:[#allocation5 + $0x1c8] sm:$0xff] %v292_v31  ;;  %vm432_vm15 = vcmp.ge.s32.totalorder %v430_v25, 0  ;;  %v482_v31 = vmul.f32 %v417_v7, %v411_v10  ;;  %v560_v2 = vadd.s32 %v1551_v15, %v558_v35  ;;  %v561_v41 = vadd.s32 %v1553_v17, %v559_v36 }
  0x89   : > { %354 = vst [vmem:[#allocation5 + $0x1d0] sm:$0xff] %v293_v32  ;;  %355 = vst [vmem:[#allocation5 + $0x1d8] sm:$0xff] %v293_v32  ;;  %v508_v44 = vmul.f32 %v2089_v59, %v413_v14  ;;  %v509_v48 = vmul.f32 %v2091_v62, %v414_v16 }
  0x8a   : > { %356 = vst [vmem:[#allocation5 + $0x1e0] sm:$0xff] %v294_v33  ;;  %357 = vst [vmem:[#allocation5 + $0x1e8] sm:$0xff] %v294_v33  ;;  %v562_v49 = vcombine.low %v560_v2, %v561_v41 }
  0x8b   : > { %358 = vst [vmem:[#allocation5 + $0x1f0] sm:$0xff] %v295_v34  ;;  %359 = vst [vmem:[#allocation5 + $0x1f8] sm:$0xff] %v295_v34  ;;  %v483_v34 = vmul.f32 %v418_v8, %v412_v12 }
  0x8c   : > { %vm2095_vm4 = vmand %vm437_vm0, %vm439_vm1  ;;  %vm434_vm0 = vcmp.le.s32.totalorder %v430_v25, 15  ;;  %v569_v54 = vrot.slane %v562_v49, %v465_v30 }
  0x8d   : > { %vm2099_vm7 = vmand %vm438_vm2, %vm440_vm3 }
  0x8e   : > { %vm2103_vm10 = vmand %vm423_vm5, %vm425_vm6  ;;  %vm445_vm5 = vcmp.ge.s32.totalorder %v443_v27, 0  ;;  %vm447_vm6 = vcmp.le.s32.totalorder %v443_v27, 15  ;;  %v576_v58 = vrot.slane %v569_v54, %v465_v30  ;;  %v595_v54 = vld [vmem:[#allocation5 + $0x20] sm:$0xff] (!%p1477_p5) }
  0x8f   : > { %vm2107_vm11 = vmand %vm424_vm8, %vm426_vm9  ;;  %vm446_vm9 = vcmp.ge.s32.totalorder %v444_v28, 0 }
  0x90   : > { %vm451_vm14 = vmand %vm2095_vm4, %vm2103_vm10 }
  0x91   : > { %vm452_vm1 = vmand %vm2099_vm7, %vm2107_vm11  ;;  %v455_v29 = vsel %vm451_vm14, %v453_v21, 0.0  ;;  %vm2138_vm14 = vcmp.lt.s32.totalorder %v263_v0, 256  ;;  %v534_v0 = vmul.f32 %v2089_v59, %v411_v10  ;;  %v589_v10 = vstv (!%p1477_p5), %s1478_s24 }
  0x92   : > { %v456_v32 = vsel %vm452_vm1, %v454_v24, 0.0  ;;  %vm2120_vm2 = vmand %vm431_vm12, %vm433_vm13  ;;  %vm448_vm12 = vcmp.le.s32.totalorder %v444_v28, 15  ;;  %577 = vst.msk [vmem:[#allocation4] sm:$0x3] %vm2138_vm14, %v576_v58  ;;  %v597_v58 = vld [vmem:[#allocation5 + $0x30] sm:$0xff] (!%p1477_p5) }
  0x93   : > { %v459_v37 = vcombine.low %v455_v29, %v456_v32  ;;  %vm2124_vm3 = vmand %vm432_vm15, %vm434_vm0 }
  0x94   : > { %vm480_vm8 = vmand %vm2095_vm4, %vm2120_vm2 }
  0x95   : > { %v466_v42 = vrot.slane %v459_v37, %v465_v30  ;;  %vm481_vm13 = vmand %vm2099_vm7, %vm2124_vm3  ;;  %v484_v43 = vsel %vm480_vm8, %v482_v31, 0.0  ;;  %v593_v31 = vld [vmem:[#allocation5 + $0x10] sm:$0xff] (!%p1477_p5)  ;;  %v596_v37 = vld [vmem:[#allocation5 + $0x28] sm:$0xff] (!%p1477_p5) }
  0x96   : > { %v485_v46 = vsel %vm481_vm13, %v483_v34, 0.0  ;;  %vm2142_vm4 = vmand %vm445_vm5, %vm447_vm6 }
  0x97   : > { %v473_v50 = vrot.slane %v466_v42, %v465_v30  ;;  %v488_v51 = vcombine.low %v484_v43, %v485_v46  ;;  %vm2148_vm7 = vmand %vm446_vm9, %vm448_vm12 }
  0x98   : > { %vm506_vm15 = vmand %vm2142_vm4, %vm2103_vm10 }
  0x99   : > { %479 = vst.msk [vmem:[#allocation3] ss:$4 sm:$0x3] %vm2138_vm14, %v473_v50  ;;  %v495_v55 = vrot.slane %v488_v51, %v465_v30  ;;  %vm507_vm0 = vmand %vm2148_vm7, %vm2107_vm11  ;;  %v510_v56 = vsel %vm506_vm15, %v508_v44, 0.0  ;;  %v587_v6 = vld [vmem:[#allocation4] sm:$0x3] (!%p1477_p5) }
  0x9a   : > { %v511_v57 = vsel %vm507_vm0, %v509_v48, 0.0  ;;  %vm532_vm1 = vmand %vm2142_vm4, %vm2120_vm2  ;;  %v590_v11 = vsub.s32 (!%p1477_p5), %v587_v6, %v589_v10  ;;  %v602_v6 = vld [vmem:[#allocation5 + $0x58] sm:$0xff] (!%p1477_p5) }
  0x9b   : > { %v502_v59 = vrot.slane %v495_v55, %v465_v30  ;;  %v514_v60 = vcombine.low %v510_v56, %v511_v57  ;;  %vm533_vm10 = vmand %vm2148_vm7, %vm2124_vm3  ;;  %v536_v61 = vsel %vm532_vm1, %v534_v0, 0.0 }
  0x9c   : > { %v537_v62 = vsel %vm533_vm10, %v535_v53, 0.0  ;;  %v2201_v18 = vrot.slane (!%p1477_p5), %v590_v11, %v2082_v40  ;;  %v734_v19 = vadd.s32 (!%p1477_p5), 1, %v590_v11  ;;  %v807_v20 = vadd.s32 (!%p1477_p5), 16, %v590_v11 }
  0x9d   : > { %505 = vst.msk [vmem:[#allocation3 + $0x1] ss:$4 sm:$0x3] %vm2138_vm14, %v502_v59  ;;  %v521_v63 = vrot.slane %v514_v60, %v465_v30  ;;  %v540_v1 = vcombine.low %v536_v61, %v537_v62  ;;  %584 = sbr.rel (%p1477_p5) target bundleno = 530 (0x212), region = 40  ;;  %v880_v21 = vadd.s32 (!%p1477_p5), 17, %v590_v11  ;;  %v2207_v25 = vrot.slane (!%p1477_p5), %v590_v11, %v2079_v39 }
  0x9e   : > { %vm671_vm11 = vcmp.eq.s32.totalorder (!%p1477_p5), %v592_v22, %v2201_v18  ;;  %vm673_vm2 = vcmp.eq.s32.totalorder (!%p1477_p5), %v594_v23, %v2201_v18  ;;  %v2218_v28 = vrot.slane (!%p1477_p5), %v734_v19, %v2082_v40  ;;  %v2221_v29 = vrot.slane (!%p1477_p5), %v807_v20, %v2082_v40 }
  0x9f   : > { %v528_v3 = vrot.slane %v521_v63, %v465_v30  ;;  %v547_v4 = vrot.slane %v540_v1, %v465_v30  ;;  %v2224_v32 = vrot.slane (!%p1477_p5), %v880_v21, %v2082_v40  ;;  %vm672_vm5 = vcmp.eq.s32.totalorder (!%p1477_p5), %v593_v31, %v2207_v25  ;;  %v600_v1 = vld [vmem:[#allocation5 + $0x48] sm:$0xff] (!%p1477_p5) }
  0xa0   : > { %v655_v7 = vld [vmem:[#allocation3] ss:$4 sm:$0x3] (!%p1477_p5)  ;;  %v2229_v33 = vrot.slane (!%p1477_p5), %v734_v19, %v2079_v39  ;;  %vm744_vm6 = vcmp.eq.s32.totalorder (!%p1477_p5), %v592_v22, %v2218_v28  ;;  %vm746_vm8 = vcmp.eq.s32.totalorder (!%p1477_p5), %v594_v23, %v2218_v28  ;;  %vm817_vm9 = vcmp.eq.s32.totalorder (!%p1477_p5), %v592_v22, %v2221_v29  ;;  %v599_v19 = vld [vmem:[#allocation5 + $0x40] sm:$0xff] (!%p1477_p5) }
  0xa1   : > { %531 = vst.msk [vmem:[#allocation3 + $0x2] ss:$4 sm:$0x3] %vm2138_vm14, %v528_v3  ;;  %v554_v5 = vrot.slane %v547_v4, %v465_v30  ;;  %v2192_v15 = vrot.slane (!%p1477_p5), %v655_v7, %v2082_v40  ;;  %v2198_v17 = vrot.slane (!%p1477_p5), %v655_v7, %v2079_v39  ;;  %v591_v30 = vld [vmem:[#allocation5] sm:$0xff] (!%p1477_p5)  ;;  %vm819_vm12 = vcmp.eq.s32.totalorder (!%p1477_p5), %v594_v23, %v2221_v29 }
  0xa2   : > { %vm670_vm3 = vcmp.eq.s32.totalorder (!%p1477_p5), %v591_v30, %v2207_v25  ;;  %vm890_vm13 = vcmp.eq.s32.totalorder (!%p1477_p5), %v592_v22, %v2224_v32  ;;  %vm743_vm4 = vcmp.eq.s32.totalorder (!%p1477_p5), %v591_v30, %v2229_v33  ;;  %vm745_vm7 = vcmp.eq.s32.totalorder (!%p1477_p5), %v593_v31, %v2229_v33  ;;  %v601_v22 = vld [vmem:[#allocation5 + $0x50] sm:$0xff] (!%p1477_p5) }
  0xa3   : > { %557 = vst.msk [vmem:[#allocation3 + $0x3] ss:$4 sm:$0x3] %vm2138_vm14, %v554_v5  ;;  %vm892_vm14 = vcmp.eq.s32.totalorder (!%p1477_p5), %v594_v23, %v2224_v32  ;;  %v2242_v35 = vrot.slane (!%p1477_p5), %v807_v20, %v2079_v39  ;;  %v2245_v36 = vrot.slane (!%p1477_p5), %v880_v21, %v2079_v39  ;;  %vm675_vm15 = vcmp.eq.s32.totalorder (!%p1477_p5), %v596_v37, %v2201_v18 }
  0xa4   : > { %v657_v8 = vld [vmem:[#allocation3 + $0x1] ss:$4 sm:$0x3]  ;;  %vm677_vm0 = vcmp.eq.s32.totalorder %v598_v38, %v2201_v18 }
  0xa5   : > { %v2186_v13 = vrot.slane %v657_v8, %v2082_v40  ;;  %v2195_v16 = vrot.slane %v657_v8, %v2079_v39  ;;  %vm816_vm1 = vcmp.eq.s32.totalorder %v591_v30, %v2242_v35  ;;  %vm818_vm10 = vcmp.eq.s32.totalorder %v593_v31, %v2242_v35 }
  0xa8   : > { %v659_v12 = vld [vmem:[#allocation3 + $0x2] ss:$4 sm:$0x3] }
  0xa9   : > { %v2204_v24 = vrot.slane %v659_v12, %v2082_v40  ;;  %v2213_v27 = vrot.slane %v659_v12, %v2079_v39 }
  0xaa   : > { %v661_v9 = vld [vmem:[#allocation3 + $0x3] ss:$4 sm:$0x3] }
  0xab   : > { %v2189_v14 = vrot.slane %v661_v9, %v2082_v40  ;;  %v2210_v26 = vrot.slane %v661_v9, %v2079_v39 }
  0xad   : > { %v965_v40 = vsel %vm890_vm13, %v2189_v14, 0.0  ;;  %v967_v34 = vsel %vm892_vm14, %v2189_v14, 0.0  ;;  %vm894_vm13 = vcmp.eq.s32.totalorder %v596_v37, %v2224_v32  ;;  %vm896_vm14 = vcmp.eq.s32.totalorder %v598_v38, %v2224_v32 }
  0xae   : > { %v1040_v2 = vsel %vm817_vm9, %v2204_v24, %v965_v40  ;;  %v1042_v41 = vsel %vm819_vm12, %v2204_v24, %v967_v34  ;;  %vm889_vm9 = vcmp.eq.s32.totalorder %v591_v30, %v2245_v36  ;;  %vm821_vm12 = vcmp.eq.s32.totalorder %v596_v37, %v2221_v29 }
  0xaf   : > { %v1115_v42 = vsel %vm744_vm6, %v2186_v13, %v1040_v2  ;;  %v1117_v43 = vsel %vm746_vm8, %v2186_v13, %v1042_v41  ;;  %vm891_vm6 = vcmp.eq.s32.totalorder %v593_v31, %v2245_v36  ;;  %v964_v46 = vsel %vm889_vm9, %v2210_v26, 0.0 }
  0xb0   : > { %v1190_v39 = vsel %vm671_vm11, %v2192_v15, %v1115_v42  ;;  %v1192_v44 = vsel %vm673_vm2, %v2192_v15, %v1117_v43  ;;  %v966_v47 = vsel %vm891_vm6, %v2210_v26, 0.0  ;;  %vm748_vm8 = vcmp.eq.s32.totalorder %v596_v37, %v2218_v28  ;;  %v606_v42 = vld [vmem:[#allocation5 + $0x78] sm:$0xff] }
  0xb1   : > { %v1486_v45 = vpack.c.bf16 %v1192_v44, %v1190_v39  ;;  %v1039_v48 = vsel %vm816_vm1, %v2213_v27, %v964_v46  ;;  %v1041_v49 = vsel %vm818_vm10, %v2213_v27, %v966_v47  ;;  %vm750_vm11 = vcmp.eq.s32.totalorder %v598_v38, %v2218_v28 }
  0xb2   : > { %v1114_v50 = vsel %vm743_vm4, %v2195_v16, %v1039_v48  ;;  %v1116_v51 = vsel %vm745_vm7, %v2195_v16, %v1041_v49  ;;  %vm823_vm2 = vcmp.eq.s32.totalorder %v598_v38, %v2221_v29  ;;  %v969_v53 = vsel %vm894_vm13, %v2189_v14, 0.0  ;;  %v604_v38 = vld [vmem:[#allocation5 + $0x68] sm:$0xff]  ;;  %v603_v49 = vld [vmem:[#allocation5 + $0x60] sm:$0xff] }
  0xb3   : > { %1487 = vmatprep.subr.bf16.mxu0 %v1486_v45  ;;  %v1189_v52 = vsel %vm670_vm3, %v2198_v17, %v1114_v50  ;;  %v1191_v0 = vsel %vm672_vm5, %v2198_v17, %v1116_v51  ;;  %v971_v56 = vsel %vm896_vm14, %v2189_v14, 0.0  ;;  %v1044_v57 = vsel %vm821_vm12, %v2204_v24, %v969_v53  ;;  %v605_v51 = vld [vmem:[#allocation5 + $0x70] sm:$0xff] }
  0xb4   : > { %v1488_v55 = vpack.c.bf16 %v1191_v0, %v1189_v52  ;;  %vm674_vm4 = vcmp.eq.s32.totalorder %v595_v54, %v2207_v25  ;;  %v1046_v59 = vsel %vm823_vm2, %v2204_v24, %v971_v56  ;;  %v1119_v60 = vsel %vm748_vm8, %v2186_v13, %v1044_v57 }
  0xb5   : > { %vm676_vm3 = vcmp.eq.s32.totalorder %v597_v58, %v2207_v25  ;;  %vm747_vm5 = vcmp.eq.s32.totalorder %v595_v54, %v2229_v33  ;;  %v1121_v61 = vsel %vm750_vm11, %v2186_v13, %v1046_v59  ;;  %v1194_v62 = vsel %vm675_vm15, %v2192_v15, %v1119_v60  ;;  %v608_v60 = vld [vmem:[#allocation5 + $0x88] sm:$0xff] }
  0xb6   : > { %1489 = vmatpush1.bf16.msra.mxu0 %v1488_v55  ;;  %vm749_vm7 = vcmp.eq.s32.totalorder %v597_v58, %v2229_v33  ;;  %vm820_vm1 = vcmp.eq.s32.totalorder %v595_v54, %v2242_v35  ;;  %v1196_v63 = vsel %vm677_vm0, %v2192_v15, %v1121_v61  ;;  %vm822_vm10 = vcmp.eq.s32.totalorder %v597_v58, %v2242_v35 }
  0xb7   : > { %vm893_vm9 = vcmp.eq.s32.totalorder %v595_v54, %v2245_v36  ;;  %vm895_vm6 = vcmp.eq.s32.totalorder %v597_v58, %v2245_v36  ;;  %v1490_v3 = vpack.c.bf16 %v1196_v63, %v1194_v62  ;;  %vm679_vm15 = vcmp.eq.s32.totalorder %v600_v1, %v2201_v18 }
  0xb8   : > { %v968_v4 = vsel %vm893_vm9, %v2210_v26, 0.0  ;;  %v970_v5 = vsel %vm895_vm6, %v2210_v26, 0.0  ;;  %vm681_vm0 = vcmp.eq.s32.totalorder %v602_v6, %v2201_v18  ;;  %vm752_vm8 = vcmp.eq.s32.totalorder %v600_v1, %v2218_v28 }
  0xb9   : > { %v1043_v7 = vsel %vm820_vm1, %v2213_v27, %v968_v4  ;;  %v1045_v8 = vsel %vm822_vm10, %v2213_v27, %v970_v5  ;;  %1491 = vmatprep.subr.bf16.mxu0 %v1490_v3  ;;  %vm754_vm11 = vcmp.eq.s32.totalorder %v602_v6, %v2218_v28  ;;  %vm825_vm12 = vcmp.eq.s32.totalorder %v600_v1, %v2221_v29 }
  0xba   : > { %v1118_v9 = vsel %vm747_vm5, %v2195_v16, %v1043_v7  ;;  %v1120_v10 = vsel %vm749_vm7, %v2195_v16, %v1045_v8  ;;  %vm827_vm2 = vcmp.eq.s32.totalorder %v602_v6, %v2221_v29  ;;  %vm898_vm13 = vcmp.eq.s32.totalorder %v600_v1, %v2224_v32  ;;  %v610_v1 = vld [vmem:[#allocation5 + $0x98] sm:$0xff] }
  0xbb   : > { %v1193_v11 = vsel %vm674_vm4, %v2198_v17, %v1118_v9  ;;  %v1195_v12 = vsel %vm676_vm3, %v2198_v17, %v1120_v10  ;;  %vm900_vm14 = vcmp.eq.s32.totalorder %v602_v6, %v2224_v32  ;;  %v973_v21 = vsel %vm898_vm13, %v2189_v14, 0.0  ;;  %v607_v9 = vld [vmem:[#allocation5 + $0x80] sm:$0xff] }
  0xbc   : > { %v1492_v20 = vpack.c.bf16 %v1195_v12, %v1193_v11  ;;  %vm678_vm5 = vcmp.eq.s32.totalorder %v599_v19, %v2207_v25  ;;  %v975_v23 = vsel %vm900_vm14, %v2189_v14, 0.0  ;;  %v1048_v30 = vsel %vm825_vm12, %v2204_v24, %v973_v21  ;;  %v609_v12 = vld [vmem:[#allocation5 + $0x90] sm:$0xff] }
  0xbd   : > { %vm680_vm4 = vcmp.eq.s32.totalorder %v601_v22, %v2207_v25  ;;  %vm751_vm3 = vcmp.eq.s32.totalorder %v599_v19, %v2229_v33  ;;  %v1050_v31 = vsel %vm827_vm2, %v2204_v24, %v975_v23  ;;  %v1123_v40 = vsel %vm752_vm8, %v2186_v13, %v1048_v30 }
  0xbe   : > { %1493 = vmatpush1.bf16.msra.mxu0 %v1492_v20  ;;  %vm753_vm7 = vcmp.eq.s32.totalorder %v601_v22, %v2229_v33  ;;  %vm824_vm1 = vcmp.eq.s32.totalorder %v599_v19, %v2242_v35  ;;  %v1125_v34 = vsel %vm754_vm11, %v2186_v13, %v1050_v31  ;;  %v1198_v37 = vsel %vm679_vm15, %v2192_v15, %v1123_v40  ;;  %v612_v31 = vld [vmem:[#allocation5 + $0xa8] sm:$0xff] }
  0xbf   : > { %vm826_vm10 = vcmp.eq.s32.totalorder %v601_v22, %v2242_v35  ;;  %vm897_vm9 = vcmp.eq.s32.totalorder %v599_v19, %v2245_v36  ;;  %v1200_v2 = vsel %vm681_vm0, %v2192_v15, %v1125_v34  ;;  %vm899_vm6 = vcmp.eq.s32.totalorder %v601_v22, %v2245_v36 }
  0xc0   : > { %v972_v41 = vsel %vm897_vm9, %v2210_v26, 0.0  ;;  %vm683_vm8 = vcmp.eq.s32.totalorder %v604_v38, %v2201_v18  ;;  %v1494_v43 = vpack.c.bf16 %v1200_v2, %v1198_v37  ;;  %v974_v39 = vsel %vm899_vm6, %v2210_v26, 0.0  ;;  %v614_v37 = vld [vmem:[#allocation5 + $0xb8] sm:$0xff] }
  0xc1   : > { %v1047_v44 = vsel %vm824_vm1, %v2213_v27, %v972_v41  ;;  %vm685_vm15 = vcmp.eq.s32.totalorder %v606_v42, %v2201_v18  ;;  %v1049_v45 = vsel %vm826_vm10, %v2213_v27, %v974_v39  ;;  %vm756_vm0 = vcmp.eq.s32.totalorder %v604_v38, %v2218_v28 }
  0xc2   : > { %v1122_v46 = vsel %vm751_vm3, %v2195_v16, %v1047_v44  ;;  %vm758_vm11 = vcmp.eq.s32.totalorder %v606_v42, %v2218_v28  ;;  %1495 = vmatprep.subr.bf16.mxu0 %v1494_v43  ;;  %v1124_v47 = vsel %vm753_vm7, %v2195_v16, %v1049_v45  ;;  %vm829_vm12 = vcmp.eq.s32.totalorder %v604_v38, %v2221_v29  ;;  %v611_v45 = vld [vmem:[#allocation5 + $0xa0] sm:$0xff] }
  0xc3   : > { %v1197_v48 = vsel %vm678_vm5, %v2198_v17, %v1122_v46  ;;  %vm831_vm2 = vcmp.eq.s32.totalorder %v606_v42, %v2221_v29  ;;  %v1199_v50 = vsel %vm680_vm4, %v2198_v17, %v1124_v47  ;;  %vm902_vm13 = vcmp.eq.s32.totalorder %v604_v38, %v2224_v32  ;;  %v613_v47 = vld [vmem:[#allocation5 + $0xb0] sm:$0xff] }
  0xc4   : > { %vm904_vm14 = vcmp.eq.s32.totalorder %v606_v42, %v2224_v32  ;;  %vm682_vm3 = vcmp.eq.s32.totalorder %v603_v49, %v2207_v25  ;;  %v1496_v52 = vpack.c.bf16 %v1199_v50, %v1197_v48  ;;  %v977_v0 = vsel %vm902_vm13, %v2189_v14, 0.0 }
  0xc5   : > { %v979_v53 = vsel %vm904_vm14, %v2189_v14, 0.0  ;;  %vm684_vm5 = vcmp.eq.s32.totalorder %v605_v51, %v2207_v25  ;;  %v1052_v54 = vsel %vm829_vm12, %v2204_v24, %v977_v0  ;;  %vm755_vm4 = vcmp.eq.s32.totalorder %v603_v49, %v2229_v33 }
  0xc6   : > { %v1054_v55 = vsel %vm831_vm2, %v2204_v24, %v979_v53  ;;  %vm757_vm7 = vcmp.eq.s32.totalorder %v605_v51, %v2229_v33  ;;  %1497 = vmatpush1.bf16.msra.mxu0 %v1496_v52  ;;  %v1127_v56 = vsel %vm756_vm0, %v2186_v13, %v1052_v54  ;;  %vm828_vm1 = vcmp.eq.s32.totalorder %v603_v49, %v2242_v35 }
  0xc7   : > { %v1129_v57 = vsel %vm758_vm11, %v2186_v13, %v1054_v55  ;;  %vm830_vm10 = vcmp.eq.s32.totalorder %v605_v51, %v2242_v35  ;;  %v1202_v58 = vsel %vm683_vm8, %v2192_v15, %v1127_v56  ;;  %vm901_vm9 = vcmp.eq.s32.totalorder %v603_v49, %v2245_v36  ;;  %v616_v56 = vld [vmem:[#allocation5 + $0xc8] sm:$0xff] }
  0xc8   : > { %v1204_v59 = vsel %vm685_vm15, %v2192_v15, %v1129_v57  ;;  %vm903_vm6 = vcmp.eq.s32.totalorder %v605_v51, %v2245_v36  ;;  %v976_v62 = vsel %vm901_vm9, %v2210_v26, 0.0  ;;  %vm687_vm0 = vcmp.eq.s32.totalorder %v608_v60, %v2201_v18 }
  0xc9   : > { %v1498_v61 = vpack.c.bf16 %v1204_v59, %v1202_v58  ;;  %v978_v63 = vsel %vm903_vm6, %v2210_v26, 0.0  ;;  %v1051_v3 = vsel %vm828_vm1, %v2213_v27, %v976_v62  ;;  %vm689_vm8 = vcmp.eq.s32.totalorder %v610_v1, %v2201_v18 }
  0xca   : > { %v1053_v4 = vsel %vm830_vm10, %v2213_v27, %v978_v63  ;;  %vm760_vm15 = vcmp.eq.s32.totalorder %v608_v60, %v2218_v28  ;;  %v1126_v5 = vsel %vm755_vm4, %v2195_v16, %v1051_v3  ;;  %vm762_vm11 = vcmp.eq.s32.totalorder %v610_v1, %v2218_v28 }
  0xcb   : > { %1499 = vmatprep.subr.bf16.mxu0 %v1498_v61  ;;  %v1128_v6 = vsel %vm757_vm7, %v2195_v16, %v1053_v4  ;;  %vm833_vm12 = vcmp.eq.s32.totalorder %v608_v60, %v2221_v29  ;;  %v1201_v7 = vsel %vm682_vm3, %v2198_v17, %v1126_v5  ;;  %vm835_vm2 = vcmp.eq.s32.totalorder %v610_v1, %v2221_v29  ;;  %v615_v5 = vld [vmem:[#allocation5 + $0xc0] sm:$0xff] }
  0xcc   : > { %v1203_v8 = vsel %vm684_vm5, %v2198_v17, %v1128_v6  ;;  %vm906_vm13 = vcmp.eq.s32.totalorder %v608_v60, %v2224_v32  ;;  %vm908_vm14 = vcmp.eq.s32.totalorder %v610_v1, %v2224_v32  ;;  %vm686_vm4 = vcmp.eq.s32.totalorder %v607_v9, %v2207_v25  ;;  %v618_v60 = vld [vmem:[#allocation5 + $0xd8] sm:$0xff] }
  0xcd   : > { %v1500_v10 = vpack.c.bf16 %v1203_v8, %v1201_v7  ;;  %v981_v11 = vsel %vm906_vm13, %v2189_v14, 0.0  ;;  %v983_v19 = vsel %vm908_vm14, %v2189_v14, 0.0  ;;  %vm688_vm3 = vcmp.eq.s32.totalorder %v609_v12, %v2207_v25  ;;  %v617_v8 = vld [vmem:[#allocation5 + $0xd0] sm:$0xff] }
  0xce   : > { %v1056_v20 = vsel %vm833_vm12, %v2204_v24, %v981_v11  ;;  %vm759_vm5 = vcmp.eq.s32.totalorder %v607_v9, %v2229_v33  ;;  %v1058_v21 = vsel %vm835_vm2, %v2204_v24, %v983_v19  ;;  %vm761_vm7 = vcmp.eq.s32.totalorder %v609_v12, %v2229_v33 }
  0xcf   : > { %1501 = vmatpush1.bf16.msra.mxu0 %v1500_v10  ;;  %v1131_v22 = vsel %vm760_vm15, %v2186_v13, %v1056_v20  ;;  %vm832_vm1 = vcmp.eq.s32.totalorder %v607_v9, %v2242_v35  ;;  %v1133_v23 = vsel %vm762_vm11, %v2186_v13, %v1058_v21  ;;  %vm834_vm10 = vcmp.eq.s32.totalorder %v609_v12, %v2242_v35  ;;  %v620_v21 = vld [vmem:[#allocation5 + $0xe8] sm:$0xff] }
  0xd0   : > { %v1206_v30 = vsel %vm687_vm0, %v2192_v15, %v1131_v22  ;;  %vm905_vm9 = vcmp.eq.s32.totalorder %v607_v9, %v2245_v36  ;;  %v1208_v40 = vsel %vm689_vm8, %v2192_v15, %v1133_v23  ;;  %vm907_vm6 = vcmp.eq.s32.totalorder %v609_v12, %v2245_v36 }
  0xd1   : > { %v980_v34 = vsel %vm905_vm9, %v2210_v26, 0.0  ;;  %vm691_vm15 = vcmp.eq.s32.totalorder %v612_v31, %v2201_v18  ;;  %v1502_v38 = vpack.c.bf16 %v1208_v40, %v1206_v30  ;;  %v982_v2 = vsel %vm907_vm6, %v2210_v26, 0.0  ;;  %v622_v30 = vld [vmem:[#allocation5 + $0xf8] sm:$0xff] }
  0xd2   : > { %v1055_v41 = vsel %vm832_vm1, %v2213_v27, %v980_v34  ;;  %vm693_vm0 = vcmp.eq.s32.totalorder %v614_v37, %v2201_v18  ;;  %v1057_v42 = vsel %vm834_vm10, %v2213_v27, %v982_v2  ;;  %vm764_vm8 = vcmp.eq.s32.totalorder %v612_v31, %v2218_v28 }
  0xd3   : > { %v1130_v43 = vsel %vm759_vm5, %v2195_v16, %v1055_v41  ;;  %vm766_vm11 = vcmp.eq.s32.totalorder %v614_v37, %v2218_v28  ;;  %1503 = vmatprep.subr.bf16.mxu0 %v1502_v38  ;;  %v1132_v39 = vsel %vm761_vm7, %v2195_v16, %v1057_v42  ;;  %vm837_vm12 = vcmp.eq.s32.totalorder %v612_v31, %v2221_v29  ;;  %v619_v42 = vld [vmem:[#allocation5 + $0xe0] sm:$0xff] }
  0xd4   : > { %v1205_v44 = vsel %vm686_vm4, %v2198_v17, %v1130_v43  ;;  %vm839_vm2 = vcmp.eq.s32.totalorder %v614_v37, %v2221_v29  ;;  %v1207_v46 = vsel %vm688_vm3, %v2198_v17, %v1132_v39  ;;  %vm910_vm13 = vcmp.eq.s32.totalorder %v612_v31, %v2224_v32  ;;  %v621_v39 = vld [vmem:[#allocation5 + $0xf0] sm:$0xff] }
  0xd5   : > { %vm912_vm14 = vcmp.eq.s32.totalorder %v614_v37, %v2224_v32  ;;  %vm690_vm5 = vcmp.eq.s32.totalorder %v611_v45, %v2207_v25  ;;  %v1504_v48 = vpack.c.bf16 %v1207_v46, %v1205_v44  ;;  %v985_v49 = vsel %vm910_vm13, %v2189_v14, 0.0 }
  0xd6   : > { %v987_v50 = vsel %vm912_vm14, %v2189_v14, 0.0  ;;  %vm692_vm4 = vcmp.eq.s32.totalorder %v613_v47, %v2207_v25  ;;  %v1060_v51 = vsel %vm837_vm12, %v2204_v24, %v985_v49  ;;  %vm763_vm3 = vcmp.eq.s32.totalorder %v611_v45, %v2229_v33 }
  0xd7   : > { %v1062_v52 = vsel %vm839_vm2, %v2204_v24, %v987_v50  ;;  %vm765_vm7 = vcmp.eq.s32.totalorder %v613_v47, %v2229_v33  ;;  %1505 = vmatpush1.bf16.msra.mxu0 %v1504_v48  ;;  %v1135_v0 = vsel %vm764_vm8, %v2186_v13, %v1060_v51  ;;  %vm836_vm1 = vcmp.eq.s32.totalorder %v611_v45, %v2242_v35 }
  0xd8   : > { %v1137_v53 = vsel %vm766_vm11, %v2186_v13, %v1062_v52  ;;  %vm838_vm10 = vcmp.eq.s32.totalorder %v613_v47, %v2242_v35  ;;  %v1210_v54 = vsel %vm691_vm15, %v2192_v15, %v1135_v0  ;;  %vm909_vm9 = vcmp.eq.s32.totalorder %v611_v45, %v2245_v36  ;;  %v624_v0 = vld [vmem:[#allocation5 + $0x108] sm:$0xff] }
  0xd9   : > { %v1212_v55 = vsel %vm693_vm0, %v2192_v15, %v1137_v53  ;;  %vm911_vm6 = vcmp.eq.s32.totalorder %v613_v47, %v2245_v36  ;;  %v984_v58 = vsel %vm909_vm9, %v2210_v26, 0.0  ;;  %vm695_vm8 = vcmp.eq.s32.totalorder %v616_v56, %v2201_v18 }
  0xda   : > { %v1506_v57 = vpack.c.bf16 %v1212_v55, %v1210_v54  ;;  %v986_v59 = vsel %vm911_vm6, %v2210_v26, 0.0  ;;  %v1059_v61 = vsel %vm836_vm1, %v2213_v27, %v984_v58  ;;  %vm697_vm15 = vcmp.eq.s32.totalorder %v618_v60, %v2201_v18 }
  0xdb   : > { %v1061_v62 = vsel %vm838_vm10, %v2213_v27, %v986_v59  ;;  %vm768_vm0 = vcmp.eq.s32.totalorder %v616_v56, %v2218_v28  ;;  %v1134_v63 = vsel %vm763_vm3, %v2195_v16, %v1059_v61  ;;  %vm770_vm11 = vcmp.eq.s32.totalorder %v618_v60, %v2218_v28 }
  0xdc   : > { %1507 = vmatprep.subr.bf16.mxu0 %v1506_v57  ;;  %v1136_v1 = vsel %vm765_vm7, %v2195_v16, %v1061_v62  ;;  %vm841_vm12 = vcmp.eq.s32.totalorder %v616_v56, %v2221_v29  ;;  %v1209_v3 = vsel %vm690_vm5, %v2198_v17, %v1134_v63  ;;  %vm843_vm2 = vcmp.eq.s32.totalorder %v618_v60, %v2221_v29  ;;  %v623_v63 = vld [vmem:[#allocation5 + $0x100] sm:$0xff] }
  0xdd   : > { %v1211_v4 = vsel %vm692_vm4, %v2198_v17, %v1136_v1  ;;  %vm914_vm13 = vcmp.eq.s32.totalorder %v616_v56, %v2224_v32  ;;  %vm916_vm14 = vcmp.eq.s32.totalorder %v618_v60, %v2224_v32  ;;  %vm694_vm3 = vcmp.eq.s32.totalorder %v615_v5, %v2207_v25  ;;  %v626_v56 = vld [vmem:[#allocation5 + $0x118] sm:$0xff] }
  0xde   : > { %v1508_v6 = vpack.c.bf16 %v1211_v4, %v1209_v3  ;;  %v989_v7 = vsel %vm914_vm13, %v2189_v14, 0.0  ;;  %v991_v9 = vsel %vm916_vm14, %v2189_v14, 0.0  ;;  %vm696_vm5 = vcmp.eq.s32.totalorder %v617_v8, %v2207_v25  ;;  %v625_v4 = vld [vmem:[#allocation5 + $0x110] sm:$0xff] }
  0xdf   : > { %v1064_v10 = vsel %vm841_vm12, %v2204_v24, %v989_v7  ;;  %vm767_vm4 = vcmp.eq.s32.totalorder %v615_v5, %v2229_v33  ;;  %v1066_v11 = vsel %vm843_vm2, %v2204_v24, %v991_v9  ;;  %vm769_vm7 = vcmp.eq.s32.totalorder %v617_v8, %v2229_v33 }
  0xe0   : > { %1509 = vmatpush1.bf16.msra.mxu0 %v1508_v6  ;;  %v1139_v12 = vsel %vm768_vm0, %v2186_v13, %v1064_v10  ;;  %vm840_vm1 = vcmp.eq.s32.totalorder %v615_v5, %v2242_v35  ;;  %v1141_v19 = vsel %vm770_vm11, %v2186_v13, %v1066_v11  ;;  %vm842_vm10 = vcmp.eq.s32.totalorder %v617_v8, %v2242_v35  ;;  %v628_v11 = vld [vmem:[#allocation5 + $0x128] sm:$0xff] }
  0xe1   : > { %v1214_v20 = vsel %vm695_vm8, %v2192_v15, %v1139_v12  ;;  %vm913_vm9 = vcmp.eq.s32.totalorder %v615_v5, %v2245_v36  ;;  %v1216_v22 = vsel %vm697_vm15, %v2192_v15, %v1141_v19  ;;  %vm915_vm6 = vcmp.eq.s32.totalorder %v617_v8, %v2245_v36 }
  0xe2   : > { %v988_v23 = vsel %vm913_vm9, %v2210_v26, 0.0  ;;  %vm699_vm0 = vcmp.eq.s32.totalorder %v620_v21, %v2201_v18  ;;  %v1510_v31 = vpack.c.bf16 %v1216_v22, %v1214_v20  ;;  %v990_v40 = vsel %vm915_vm6, %v2210_v26, 0.0  ;;  %v630_v20 = vld [vmem:[#allocation5 + $0x138] sm:$0xff] }
  0xe3   : > { %v1063_v34 = vsel %vm840_vm1, %v2213_v27, %v988_v23  ;;  %vm701_vm8 = vcmp.eq.s32.totalorder %v622_v30, %v2201_v18  ;;  %v1065_v37 = vsel %vm842_vm10, %v2213_v27, %v990_v40  ;;  %vm772_vm15 = vcmp.eq.s32.totalorder %v620_v21, %v2218_v28 }
  0xe4   : > { %v1138_v38 = vsel %vm767_vm4, %v2195_v16, %v1063_v34  ;;  %vm774_vm11 = vcmp.eq.s32.totalorder %v622_v30, %v2218_v28  ;;  %1511 = vmatprep.subr.bf16.mxu0 %v1510_v31  ;;  %v1140_v2 = vsel %vm769_vm7, %v2195_v16, %v1065_v37  ;;  %vm845_vm12 = vcmp.eq.s32.totalorder %v620_v21, %v2221_v29  ;;  %v627_v37 = vld [vmem:[#allocation5 + $0x120] sm:$0xff] }
  0xe5   : > { %v1213_v41 = vsel %vm694_vm3, %v2198_v17, %v1138_v38  ;;  %vm847_vm2 = vcmp.eq.s32.totalorder %v622_v30, %v2221_v29  ;;  %v1215_v43 = vsel %vm696_vm5, %v2198_v17, %v1140_v2  ;;  %vm918_vm13 = vcmp.eq.s32.totalorder %v620_v21, %v2224_v32  ;;  %v629_v2 = vld [vmem:[#allocation5 + $0x130] sm:$0xff] }
  0xe6   : > { %vm920_vm14 = vcmp.eq.s32.totalorder %v622_v30, %v2224_v32  ;;  %vm698_vm4 = vcmp.eq.s32.totalorder %v619_v42, %v2207_v25  ;;  %v1512_v44 = vpack.c.bf16 %v1215_v43, %v1213_v41  ;;  %v993_v45 = vsel %vm918_vm13, %v2189_v14, 0.0 }
  0xe7   : > { %v995_v46 = vsel %vm920_vm14, %v2189_v14, 0.0  ;;  %vm700_vm3 = vcmp.eq.s32.totalorder %v621_v39, %v2207_v25  ;;  %v1068_v47 = vsel %vm845_vm12, %v2204_v24, %v993_v45  ;;  %vm771_vm5 = vcmp.eq.s32.totalorder %v619_v42, %v2229_v33 }
  0xe8   : > { %v1070_v48 = vsel %vm847_vm2, %v2204_v24, %v995_v46  ;;  %vm773_vm7 = vcmp.eq.s32.totalorder %v621_v39, %v2229_v33  ;;  %1513 = vmatpush1.bf16.msra.mxu0 %v1512_v44  ;;  %v1143_v49 = vsel %vm772_vm15, %v2186_v13, %v1068_v47  ;;  %vm844_vm1 = vcmp.eq.s32.totalorder %v619_v42, %v2242_v35 }
  0xe9   : > { %v1145_v50 = vsel %vm774_vm11, %v2186_v13, %v1070_v48  ;;  %vm846_vm10 = vcmp.eq.s32.totalorder %v621_v39, %v2242_v35  ;;  %v1218_v51 = vsel %vm699_vm0, %v2192_v15, %v1143_v49  ;;  %vm917_vm9 = vcmp.eq.s32.totalorder %v619_v42, %v2245_v36  ;;  %v632_v49 = vld [vmem:[#allocation5 + $0x148] sm:$0xff] }
  0xea   : > { %v1220_v52 = vsel %vm701_vm8, %v2192_v15, %v1145_v50  ;;  %vm919_vm6 = vcmp.eq.s32.totalorder %v621_v39, %v2245_v36  ;;  %v992_v54 = vsel %vm917_vm9, %v2210_v26, 0.0  ;;  %vm703_vm15 = vcmp.eq.s32.totalorder %v624_v0, %v2201_v18 }
  0xeb   : > { %v1514_v53 = vpack.c.bf16 %v1220_v52, %v1218_v51  ;;  %v994_v55 = vsel %vm919_vm6, %v2210_v26, 0.0  ;;  %v1067_v57 = vsel %vm844_vm1, %v2213_v27, %v992_v54  ;;  %vm705_vm0 = vcmp.eq.s32.totalorder %v626_v56, %v2201_v18 }
  0xec   : > { %v1069_v58 = vsel %vm846_vm10, %v2213_v27, %v994_v55  ;;  %vm776_vm8 = vcmp.eq.s32.totalorder %v624_v0, %v2218_v28  ;;  %v1142_v59 = vsel %vm771_vm5, %v2195_v16, %v1067_v57  ;;  %vm778_vm11 = vcmp.eq.s32.totalorder %v626_v56, %v2218_v28 }
  0xed   : > { %1515 = vmatprep.subr.bf16.mxu0 %v1514_v53  ;;  %v1144_v60 = vsel %vm773_vm7, %v2195_v16, %v1069_v58  ;;  %vm849_vm12 = vcmp.eq.s32.totalorder %v624_v0, %v2221_v29  ;;  %v1217_v61 = vsel %vm698_vm4, %v2198_v17, %v1142_v59  ;;  %vm851_vm2 = vcmp.eq.s32.totalorder %v626_v56, %v2221_v29  ;;  %v631_v59 = vld [vmem:[#allocation5 + $0x140] sm:$0xff] }
  0xee   : > { %v1219_v62 = vsel %vm700_vm3, %v2198_v17, %v1144_v60  ;;  %vm922_vm13 = vcmp.eq.s32.totalorder %v624_v0, %v2224_v32  ;;  %vm924_vm14 = vcmp.eq.s32.totalorder %v626_v56, %v2224_v32  ;;  %vm702_vm5 = vcmp.eq.s32.totalorder %v623_v63, %v2207_v25  ;;  %v634_v0 = vld [vmem:[#allocation5 + $0x158] sm:$0xff] }
  0xef   : > { %v1516_v1 = vpack.c.bf16 %v1219_v62, %v1217_v61  ;;  %v997_v3 = vsel %vm922_vm13, %v2189_v14, 0.0  ;;  %v999_v5 = vsel %vm924_vm14, %v2189_v14, 0.0  ;;  %vm704_vm4 = vcmp.eq.s32.totalorder %v625_v4, %v2207_v25  ;;  %v633_v62 = vld [vmem:[#allocation5 + $0x150] sm:$0xff] }
  0xf0   : > { %v1072_v6 = vsel %vm849_vm12, %v2204_v24, %v997_v3  ;;  %vm775_vm3 = vcmp.eq.s32.totalorder %v623_v63, %v2229_v33  ;;  %v1074_v7 = vsel %vm851_vm2, %v2204_v24, %v999_v5  ;;  %vm777_vm7 = vcmp.eq.s32.totalorder %v625_v4, %v2229_v33 }
  0xf1   : > { %1517 = vmatpush1.bf16.msra.mxu0 %v1516_v1  ;;  %v1147_v8 = vsel %vm776_vm8, %v2186_v13, %v1072_v6  ;;  %vm848_vm1 = vcmp.eq.s32.totalorder %v623_v63, %v2242_v35  ;;  %v1149_v9 = vsel %vm778_vm11, %v2186_v13, %v1074_v7  ;;  %vm850_vm10 = vcmp.eq.s32.totalorder %v625_v4, %v2242_v35  ;;  %v636_v7 = vld [vmem:[#allocation5 + $0x168] sm:$0xff] }
  0xf2   : > { %v1222_v10 = vsel %vm703_vm15, %v2192_v15, %v1147_v8  ;;  %vm921_vm9 = vcmp.eq.s32.totalorder %v623_v63, %v2245_v36  ;;  %v1224_v12 = vsel %vm705_vm0, %v2192_v15, %v1149_v9  ;;  %vm923_vm6 = vcmp.eq.s32.totalorder %v625_v4, %v2245_v36 }
  0xf3   : > { %v996_v19 = vsel %vm921_vm9, %v2210_v26, 0.0  ;;  %vm707_vm8 = vcmp.eq.s32.totalorder %v628_v11, %v2201_v18  ;;  %v1518_v21 = vpack.c.bf16 %v1224_v12, %v1222_v10  ;;  %v998_v22 = vsel %vm923_vm6, %v2210_v26, 0.0  ;;  %v638_v10 = vld [vmem:[#allocation5 + $0x178] sm:$0xff] }
  0xf4   : > { %v1071_v23 = vsel %vm848_vm1, %v2213_v27, %v996_v19  ;;  %vm709_vm15 = vcmp.eq.s32.totalorder %v630_v20, %v2201_v18  ;;  %v1073_v30 = vsel %vm850_vm10, %v2213_v27, %v998_v22  ;;  %vm780_vm0 = vcmp.eq.s32.totalorder %v628_v11, %v2218_v28 }
  0xf5   : > { %v1146_v31 = vsel %vm775_vm3, %v2195_v16, %v1071_v23  ;;  %vm782_vm11 = vcmp.eq.s32.totalorder %v630_v20, %v2218_v28  ;;  %1519 = vmatprep.subr.bf16.mxu0 %v1518_v21  ;;  %v1148_v40 = vsel %vm777_vm7, %v2195_v16, %v1073_v30  ;;  %vm853_vm12 = vcmp.eq.s32.totalorder %v628_v11, %v2221_v29  ;;  %v635_v30 = vld [vmem:[#allocation5 + $0x160] sm:$0xff] }
  0xf6   : > { %v1221_v34 = vsel %vm702_vm5, %v2198_v17, %v1146_v31  ;;  %vm855_vm2 = vcmp.eq.s32.totalorder %v630_v20, %v2221_v29  ;;  %v1223_v38 = vsel %vm704_vm4, %v2198_v17, %v1148_v40  ;;  %vm926_vm13 = vcmp.eq.s32.totalorder %v628_v11, %v2224_v32  ;;  %v637_v40 = vld [vmem:[#allocation5 + $0x170] sm:$0xff] }
  0xf7   : > { %vm928_vm14 = vcmp.eq.s32.totalorder %v630_v20, %v2224_v32  ;;  %vm706_vm3 = vcmp.eq.s32.totalorder %v627_v37, %v2207_v25  ;;  %v1520_v41 = vpack.c.bf16 %v1223_v38, %v1221_v34  ;;  %v1001_v42 = vsel %vm926_vm13, %v2189_v14, 0.0 }
  0xf8   : > { %v1003_v43 = vsel %vm928_vm14, %v2189_v14, 0.0  ;;  %vm708_vm5 = vcmp.eq.s32.totalorder %v629_v2, %v2207_v25  ;;  %v1076_v39 = vsel %vm853_vm12, %v2204_v24, %v1001_v42  ;;  %vm779_vm4 = vcmp.eq.s32.totalorder %v627_v37, %v2229_v33 }
  0xf9   : > { %v1078_v44 = vsel %vm855_vm2, %v2204_v24, %v1003_v43  ;;  %vm781_vm7 = vcmp.eq.s32.totalorder %v629_v2, %v2229_v33  ;;  %1521 = vmatpush1.bf16.msra.mxu0 %v1520_v41  ;;  %v1151_v45 = vsel %vm780_vm0, %v2186_v13, %v1076_v39  ;;  %vm852_vm1 = vcmp.eq.s32.totalorder %v627_v37, %v2242_v35 }
  0xfa   : > { %v1153_v46 = vsel %vm782_vm11, %v2186_v13, %v1078_v44  ;;  %vm854_vm10 = vcmp.eq.s32.totalorder %v629_v2, %v2242_v35  ;;  %v1226_v47 = vsel %vm707_vm8, %v2192_v15, %v1151_v45  ;;  %vm925_vm9 = vcmp.eq.s32.totalorder %v627_v37, %v2245_v36  ;;  %v640_v45 = vld [vmem:[#allocation5 + $0x188] sm:$0xff] }
  0xfb   : > { %v1228_v48 = vsel %vm709_vm15, %v2192_v15, %v1153_v46  ;;  %vm927_vm6 = vcmp.eq.s32.totalorder %v629_v2, %v2245_v36  ;;  %v1000_v51 = vsel %vm925_vm9, %v2210_v26, 0.0  ;;  %vm711_vm0 = vcmp.eq.s32.totalorder %v632_v49, %v2201_v18 }
  0xfc   : > { %v1522_v50 = vpack.c.bf16 %v1228_v48, %v1226_v47  ;;  %v1002_v52 = vsel %vm927_vm6, %v2210_v26, 0.0  ;;  %v1075_v53 = vsel %vm852_vm1, %v2213_v27, %v1000_v51  ;;  %vm713_vm8 = vcmp.eq.s32.totalorder %v634_v0, %v2201_v18 }
  0xfd   : > { %v1077_v54 = vsel %vm854_vm10, %v2213_v27, %v1002_v52  ;;  %vm784_vm15 = vcmp.eq.s32.totalorder %v632_v49, %v2218_v28  ;;  %v1150_v55 = vsel %vm779_vm4, %v2195_v16, %v1075_v53  ;;  %vm786_vm11 = vcmp.eq.s32.totalorder %v634_v0, %v2218_v28 }
  0xfe   : > { %1523 = vmatprep.subr.bf16.mxu0 %v1522_v50  ;;  %v1152_v56 = vsel %vm781_vm7, %v2195_v16, %v1077_v54  ;;  %vm857_vm12 = vcmp.eq.s32.totalorder %v632_v49, %v2221_v29  ;;  %v1225_v57 = vsel %vm706_vm3, %v2198_v17, %v1150_v55  ;;  %vm859_vm2 = vcmp.eq.s32.totalorder %v634_v0, %v2221_v29  ;;  %v639_v55 = vld [vmem:[#allocation5 + $0x180] sm:$0xff] }
  0xff   : > { %v1227_v58 = vsel %vm708_vm5, %v2198_v17, %v1152_v56  ;;  %vm930_vm13 = vcmp.eq.s32.totalorder %v632_v49, %v2224_v32  ;;  %vm932_vm14 = vcmp.eq.s32.totalorder %v634_v0, %v2224_v32  ;;  %vm710_vm4 = vcmp.eq.s32.totalorder %v631_v59, %v2207_v25  ;;  %v642_v49 = vld [vmem:[#allocation5 + $0x198] sm:$0xff] }
 0x100   : > { %v1524_v60 = vpack.c.bf16 %v1227_v58, %v1225_v57  ;;  %v1005_v61 = vsel %vm930_vm13, %v2189_v14, 0.0  ;;  %v1007_v63 = vsel %vm932_vm14, %v2189_v14, 0.0  ;;  %vm712_vm3 = vcmp.eq.s32.totalorder %v633_v62, %v2207_v25  ;;  %v641_v58 = vld [vmem:[#allocation5 + $0x190] sm:$0xff] }
 0x101   : > { %v1080_v1 = vsel %vm857_vm12, %v2204_v24, %v1005_v61  ;;  %vm783_vm5 = vcmp.eq.s32.totalorder %v631_v59, %v2229_v33  ;;  %v1082_v3 = vsel %vm859_vm2, %v2204_v24, %v1007_v63  ;;  %vm785_vm7 = vcmp.eq.s32.totalorder %v633_v62, %v2229_v33 }
 0x102   : > { %1525 = vmatpush1.bf16.msra.mxu0 %v1524_v60  ;;  %v1155_v4 = vsel %vm784_vm15, %v2186_v13, %v1080_v1  ;;  %vm856_vm1 = vcmp.eq.s32.totalorder %v631_v59, %v2242_v35  ;;  %v1157_v5 = vsel %vm786_vm11, %v2186_v13, %v1082_v3  ;;  %vm858_vm10 = vcmp.eq.s32.totalorder %v633_v62, %v2242_v35  ;;  %v644_v3 = vld [vmem:[#allocation5 + $0x1a8] sm:$0xff] }
 0x103   : > { %v1230_v6 = vsel %vm711_vm0, %v2192_v15, %v1155_v4  ;;  %vm929_vm9 = vcmp.eq.s32.totalorder %v631_v59, %v2245_v36  ;;  %v1232_v8 = vsel %vm713_vm8, %v2192_v15, %v1157_v5  ;;  %vm931_vm6 = vcmp.eq.s32.totalorder %v633_v62, %v2245_v36 }
 0x104   : > { %v1004_v9 = vsel %vm929_vm9, %v2210_v26, 0.0  ;;  %vm715_vm15 = vcmp.eq.s32.totalorder %v636_v7, %v2201_v18  ;;  %v1526_v11 = vpack.c.bf16 %v1232_v8, %v1230_v6  ;;  %v1006_v12 = vsel %vm931_vm6, %v2210_v26, 0.0  ;;  %v646_v6 = vld [vmem:[#allocation5 + $0x1b8] sm:$0xff] }
 0x105   : > { %v1079_v19 = vsel %vm856_vm1, %v2213_v27, %v1004_v9  ;;  %vm717_vm0 = vcmp.eq.s32.totalorder %v638_v10, %v2201_v18  ;;  %v1081_v20 = vsel %vm858_vm10, %v2213_v27, %v1006_v12  ;;  %vm788_vm8 = vcmp.eq.s32.totalorder %v636_v7, %v2218_v28 }
 0x106   : > { %v1154_v21 = vsel %vm783_vm5, %v2195_v16, %v1079_v19  ;;  %vm790_vm11 = vcmp.eq.s32.totalorder %v638_v10, %v2218_v28  ;;  %1527 = vmatprep.subr.bf16.mxu0 %v1526_v11  ;;  %v1156_v22 = vsel %vm785_vm7, %v2195_v16, %v1081_v20  ;;  %vm861_vm12 = vcmp.eq.s32.totalorder %v636_v7, %v2221_v29  ;;  %v643_v20 = vld [vmem:[#allocation5 + $0x1a0] sm:$0xff] }
 0x107   : > { %v1229_v23 = vsel %vm710_vm4, %v2198_v17, %v1154_v21  ;;  %vm863_vm2 = vcmp.eq.s32.totalorder %v638_v10, %v2221_v29  ;;  %v1231_v31 = vsel %vm712_vm3, %v2198_v17, %v1156_v22  ;;  %vm934_vm13 = vcmp.eq.s32.totalorder %v636_v7, %v2224_v32  ;;  %v645_v22 = vld [vmem:[#allocation5 + $0x1b0] sm:$0xff] }
 0x108   : > { %vm936_vm14 = vcmp.eq.s32.totalorder %v638_v10, %v2224_v32  ;;  %vm714_vm5 = vcmp.eq.s32.totalorder %v635_v30, %v2207_v25  ;;  %v1528_v34 = vpack.c.bf16 %v1231_v31, %v1229_v23  ;;  %v1009_v37 = vsel %vm934_vm13, %v2189_v14, 0.0 }
 0x109   : > { %v1011_v38 = vsel %vm936_vm14, %v2189_v14, 0.0  ;;  %vm716_vm4 = vcmp.eq.s32.totalorder %v637_v40, %v2207_v25  ;;  %v1084_v2 = vsel %vm861_vm12, %v2204_v24, %v1009_v37  ;;  %vm787_vm3 = vcmp.eq.s32.totalorder %v635_v30, %v2229_v33 }
 0x10a   : > { %v1086_v41 = vsel %vm863_vm2, %v2204_v24, %v1011_v38  ;;  %vm789_vm7 = vcmp.eq.s32.totalorder %v637_v40, %v2229_v33  ;;  %1529 = vmatpush1.bf16.msra.mxu0 %v1528_v34  ;;  %v1159_v42 = vsel %vm788_vm8, %v2186_v13, %v1084_v2  ;;  %vm860_vm1 = vcmp.eq.s32.totalorder %v635_v30, %v2242_v35 }
 0x10b   : > { %v1161_v43 = vsel %vm790_vm11, %v2186_v13, %v1086_v41  ;;  %vm862_vm10 = vcmp.eq.s32.totalorder %v637_v40, %v2242_v35  ;;  %v1234_v39 = vsel %vm715_vm15, %v2192_v15, %v1159_v42  ;;  %vm933_vm9 = vcmp.eq.s32.totalorder %v635_v30, %v2245_v36  ;;  %v648_v42 = vld [vmem:[#allocation5 + $0x1c8] sm:$0xff] }
 0x10c   : > { %v1236_v44 = vsel %vm717_vm0, %v2192_v15, %v1161_v43  ;;  %vm935_vm6 = vcmp.eq.s32.totalorder %v637_v40, %v2245_v36  ;;  %v1008_v47 = vsel %vm933_vm9, %v2210_v26, 0.0  ;;  %vm719_vm8 = vcmp.eq.s32.totalorder %v640_v45, %v2201_v18 }
 0x10d   : > { %v1530_v46 = vpack.c.bf16 %v1236_v44, %v1234_v39  ;;  %v1010_v48 = vsel %vm935_vm6, %v2210_v26, 0.0  ;;  %v1083_v50 = vsel %vm860_vm1, %v2213_v27, %v1008_v47  ;;  %vm721_vm15 = vcmp.eq.s32.totalorder %v642_v49, %v2201_v18 }
 0x10e   : > { %v1085_v51 = vsel %vm862_vm10, %v2213_v27, %v1010_v48  ;;  %vm792_vm0 = vcmp.eq.s32.totalorder %v640_v45, %v2218_v28  ;;  %v1158_v52 = vsel %vm787_vm3, %v2195_v16, %v1083_v50  ;;  %vm794_vm11 = vcmp.eq.s32.totalorder %v642_v49, %v2218_v28 }
 0x10f   : > { %1531 = vmatprep.subr.bf16.mxu0 %v1530_v46  ;;  %v1160_v0 = vsel %vm789_vm7, %v2195_v16, %v1085_v51  ;;  %vm865_vm12 = vcmp.eq.s32.totalorder %v640_v45, %v2221_v29  ;;  %v1233_v53 = vsel %vm714_vm5, %v2198_v17, %v1158_v52  ;;  %vm867_vm2 = vcmp.eq.s32.totalorder %v642_v49, %v2221_v29  ;;  %v647_v52 = vld [vmem:[#allocation5 + $0x1c0] sm:$0xff] }
 0x110   : > { %v1235_v54 = vsel %vm716_vm4, %v2198_v17, %v1160_v0  ;;  %vm938_vm13 = vcmp.eq.s32.totalorder %v640_v45, %v2224_v32  ;;  %vm940_vm14 = vcmp.eq.s32.totalorder %v642_v49, %v2224_v32  ;;  %vm718_vm3 = vcmp.eq.s32.totalorder %v639_v55, %v2207_v25  ;;  %v650_v45 = vld [vmem:[#allocation5 + $0x1d8] sm:$0xff] }
 0x111   : > { %v1532_v56 = vpack.c.bf16 %v1235_v54, %v1233_v53  ;;  %v1013_v57 = vsel %vm938_vm13, %v2189_v14, 0.0  ;;  %v1015_v59 = vsel %vm940_vm14, %v2189_v14, 0.0  ;;  %vm720_vm5 = vcmp.eq.s32.totalorder %v641_v58, %v2207_v25  ;;  %v649_v54 = vld [vmem:[#allocation5 + $0x1d0] sm:$0xff] }
 0x112   : > { %v1088_v60 = vsel %vm865_vm12, %v2204_v24, %v1013_v57  ;;  %vm791_vm4 = vcmp.eq.s32.totalorder %v639_v55, %v2229_v33  ;;  %v1090_v61 = vsel %vm867_vm2, %v2204_v24, %v1015_v59  ;;  %vm793_vm7 = vcmp.eq.s32.totalorder %v641_v58, %v2229_v33 }
 0x113   : > { %1533 = vmatpush1.bf16.msra.mxu0 %v1532_v56  ;;  %v1163_v62 = vsel %vm792_vm0, %v2186_v13, %v1088_v60  ;;  %vm864_vm1 = vcmp.eq.s32.totalorder %v639_v55, %v2242_v35  ;;  %v1165_v63 = vsel %vm794_vm11, %v2186_v13, %v1090_v61  ;;  %vm866_vm10 = vcmp.eq.s32.totalorder %v641_v58, %v2242_v35  ;;  %v652_v61 = vld [vmem:[#allocation5 + $0x1e8] sm:$0xff] }
 0x114   : > { %v1238_v1 = vsel %vm719_vm8, %v2192_v15, %v1163_v62  ;;  %vm937_vm9 = vcmp.eq.s32.totalorder %v639_v55, %v2245_v36  ;;  %v1240_v4 = vsel %vm721_vm15, %v2192_v15, %v1165_v63  ;;  %vm939_vm6 = vcmp.eq.s32.totalorder %v641_v58, %v2245_v36 }
 0x115   : > { %v1012_v5 = vsel %vm937_vm9, %v2210_v26, 0.0  ;;  %vm723_vm0 = vcmp.eq.s32.totalorder %v644_v3, %v2201_v18  ;;  %v1534_v7 = vpack.c.bf16 %v1240_v4, %v1238_v1  ;;  %v1014_v8 = vsel %vm939_vm6, %v2210_v26, 0.0  ;;  %v654_v1 = vld [vmem:[#allocation5 + $0x1f8] sm:$0xff] }
 0x116   : > { %v1087_v9 = vsel %vm864_vm1, %v2213_v27, %v1012_v5  ;;  %vm725_vm8 = vcmp.eq.s32.totalorder %v646_v6, %v2201_v18  ;;  %v1089_v10 = vsel %vm866_vm10, %v2213_v27, %v1014_v8  ;;  %vm796_vm15 = vcmp.eq.s32.totalorder %v644_v3, %v2218_v28 }
 0x117   : > { %v1162_v11 = vsel %vm791_vm4, %v2195_v16, %v1087_v9  ;;  %vm798_vm11 = vcmp.eq.s32.totalorder %v646_v6, %v2218_v28  ;;  %1535 = vmatprep.subr.bf16.mxu0 %v1534_v7  ;;  %v1164_v12 = vsel %vm793_vm7, %v2195_v16, %v1089_v10  ;;  %vm869_vm12 = vcmp.eq.s32.totalorder %v644_v3, %v2221_v29  ;;  %v651_v10 = vld [vmem:[#allocation5 + $0x1e0] sm:$0xff] }
 0x118   : > { %v1237_v19 = vsel %vm718_vm3, %v2198_v17, %v1162_v11  ;;  %vm871_vm2 = vcmp.eq.s32.totalorder %v646_v6, %v2221_v29  ;;  %v1239_v21 = vsel %vm720_vm5, %v2198_v17, %v1164_v12  ;;  %vm942_vm13 = vcmp.eq.s32.totalorder %v644_v3, %v2224_v32  ;;  %v653_v12 = vld [vmem:[#allocation5 + $0x1f0] sm:$0xff] }
 0x119   : > { %vm944_vm14 = vcmp.eq.s32.totalorder %v646_v6, %v2224_v32  ;;  %vm722_vm4 = vcmp.eq.s32.totalorder %v643_v20, %v2207_v25  ;;  %v1536_v23 = vpack.c.bf16 %v1239_v21, %v1237_v19  ;;  %v1017_v30 = vsel %vm942_vm13, %v2189_v14, 0.0 }
 0x11a   : > { %v1019_v31 = vsel %vm944_vm14, %v2189_v14, 0.0  ;;  %vm724_vm3 = vcmp.eq.s32.totalorder %v645_v22, %v2207_v25  ;;  %v1092_v40 = vsel %vm869_vm12, %v2204_v24, %v1017_v30  ;;  %vm795_vm5 = vcmp.eq.s32.totalorder %v643_v20, %v2229_v33 }
 0x11b   : > { %v1094_v34 = vsel %vm871_vm2, %v2204_v24, %v1019_v31  ;;  %vm797_vm7 = vcmp.eq.s32.totalorder %v645_v22, %v2229_v33  ;;  %1537 = vmatpush1.bf16.msra.mxu0 %v1536_v23  ;;  %v1167_v37 = vsel %vm796_vm15, %v2186_v13, %v1092_v40  ;;  %vm868_vm1 = vcmp.eq.s32.totalorder %v643_v20, %v2242_v35 }
 0x11c   : > { %v1169_v38 = vsel %vm798_vm11, %v2186_v13, %v1094_v34  ;;  %vm870_vm10 = vcmp.eq.s32.totalorder %v645_v22, %v2242_v35  ;;  %v1242_v2 = vsel %vm723_vm0, %v2192_v15, %v1167_v37  ;;  %vm941_vm9 = vcmp.eq.s32.totalorder %v643_v20, %v2245_v36 }
 0x11d   : > { %v1244_v41 = vsel %vm725_vm8, %v2192_v15, %v1169_v38  ;;  %vm943_vm6 = vcmp.eq.s32.totalorder %v645_v22, %v2245_v36  ;;  %v1016_v39 = vsel %vm941_vm9, %v2210_v26, 0.0  ;;  %vm727_vm15 = vcmp.eq.s32.totalorder %v648_v42, %v2201_v18  ;;  %v1253_v38 = vld [vmem:[#allocation2] sm:$0xff] }
 0x11e   : > { %v1538_v43 = vpack.c.bf16 %v1244_v41, %v1242_v2  ;;  %v1018_v44 = vsel %vm943_vm6, %v2210_v26, 0.0  ;;  %v1091_v46 = vsel %vm868_vm1, %v2213_v27, %v1016_v39  ;;  %vm729_vm0 = vcmp.eq.s32.totalorder %v650_v45, %v2201_v18 }
 0x11f   : > { %v1093_v47 = vsel %vm870_vm10, %v2213_v27, %v1018_v44  ;;  %vm800_vm8 = vcmp.eq.s32.totalorder %v648_v42, %v2218_v28  ;;  %v1166_v48 = vsel %vm795_vm5, %v2195_v16, %v1091_v46  ;;  %vm802_vm11 = vcmp.eq.s32.totalorder %v650_v45, %v2218_v28 }
 0x120   : > { %1539 = vmatprep.subr.bf16.mxu0 %v1538_v43  ;;  %v1168_v49 = vsel %vm797_vm7, %v2195_v16, %v1093_v47  ;;  %vm873_vm12 = vcmp.eq.s32.totalorder %v648_v42, %v2221_v29  ;;  %v1241_v50 = vsel %vm722_vm4, %v2198_v17, %v1166_v48  ;;  %vm875_vm2 = vcmp.eq.s32.totalorder %v650_v45, %v2221_v29 }
 0x121   : > { %v1243_v51 = vsel %vm724_vm3, %v2198_v17, %v1168_v49  ;;  %vm946_vm13 = vcmp.eq.s32.totalorder %v648_v42, %v2224_v32  ;;  %vm948_vm14 = vcmp.eq.s32.totalorder %v650_v45, %v2224_v32  ;;  %vm726_vm5 = vcmp.eq.s32.totalorder %v647_v52, %v2207_v25 }
 0x122   : > { %v1540_v0 = vpack.c.bf16 %v1243_v51, %v1241_v50  ;;  %v1021_v53 = vsel %vm946_vm13, %v2189_v14, 0.0  ;;  %v1023_v55 = vsel %vm948_vm14, %v2189_v14, 0.0  ;;  %vm728_vm4 = vcmp.eq.s32.totalorder %v649_v54, %v2207_v25 }
 0x123   : > { %v1096_v56 = vsel %vm873_vm12, %v2204_v24, %v1021_v53  ;;  %vm799_vm3 = vcmp.eq.s32.totalorder %v647_v52, %v2229_v33  ;;  %v1098_v57 = vsel %vm875_vm2, %v2204_v24, %v1023_v55  ;;  %vm801_vm7 = vcmp.eq.s32.totalorder %v649_v54, %v2229_v33 }
 0x124   : > { %1541 = vmatpush1.bf16.msra.mxu0 %v1540_v0  ;;  %v1171_v58 = vsel %vm800_vm8, %v2186_v13, %v1096_v56  ;;  %vm872_vm1 = vcmp.eq.s32.totalorder %v647_v52, %v2242_v35  ;;  %v1173_v59 = vsel %vm802_vm11, %v2186_v13, %v1098_v57  ;;  %vm874_vm10 = vcmp.eq.s32.totalorder %v649_v54, %v2242_v35 }
 0x125   : > { %v1246_v60 = vsel %vm727_vm15, %v2192_v15, %v1171_v58  ;;  %vm945_vm9 = vcmp.eq.s32.totalorder %v647_v52, %v2245_v36  ;;  %v1248_v62 = vsel %vm729_vm0, %v2192_v15, %v1173_v59  ;;  %vm947_vm6 = vcmp.eq.s32.totalorder %v649_v54, %v2245_v36 }
 0x126   : > { %v1020_v63 = vsel %vm945_vm9, %v2210_v26, 0.0  ;;  %vm731_vm8 = vcmp.eq.s32.totalorder %v652_v61, %v2201_v18  ;;  %v1542_v3 = vpack.c.bf16 %v1248_v62, %v1246_v60  ;;  %v1022_v4 = vsel %vm947_vm6, %v2210_v26, 0.0 }
 0x127   : > { %v1095_v5 = vsel %vm872_vm1, %v2213_v27, %v1020_v63  ;;  %vm733_vm15 = vcmp.eq.s32.totalorder %v654_v1, %v2201_v18  ;;  %v1097_v6 = vsel %vm874_vm10, %v2213_v27, %v1022_v4  ;;  %vm804_vm0 = vcmp.eq.s32.totalorder %v652_v61, %v2218_v28 }
 0x128   : > { %v1170_v7 = vsel %vm799_vm3, %v2195_v16, %v1095_v5  ;;  %vm806_vm11 = vcmp.eq.s32.totalorder %v654_v1, %v2218_v28  ;;  %1543 = vmatprep.subr.bf16.mxu0 %v1542_v3  ;;  %v1172_v8 = vsel %vm801_vm7, %v2195_v16, %v1097_v6  ;;  %vm877_vm12 = vcmp.eq.s32.totalorder %v652_v61, %v2221_v29 }
 0x129   : > { %v1245_v9 = vsel %vm726_vm5, %v2198_v17, %v1170_v7  ;;  %vm879_vm2 = vcmp.eq.s32.totalorder %v654_v1, %v2221_v29  ;;  %v1247_v11 = vsel %vm728_vm4, %v2198_v17, %v1172_v8  ;;  %vm950_vm13 = vcmp.eq.s32.totalorder %v652_v61, %v2224_v32 }
 0x12a   : > { %vm952_vm14 = vcmp.eq.s32.totalorder %v654_v1, %v2224_v32  ;;  %vm730_vm3 = vcmp.eq.s32.totalorder %v651_v10, %v2207_v25  ;;  %v1544_v19 = vpack.c.bf16 %v1247_v11, %v1245_v9  ;;  %v1025_v20 = vsel %vm950_vm13, %v2189_v14, 0.0  ;;  %v1254_v32 = vld [vmem:[%s209_s13] sm:$0xff] }
 0x12b   : > { %v1027_v21 = vsel %vm952_vm14, %v2189_v14, 0.0  ;;  %vm732_vm5 = vcmp.eq.s32.totalorder %v653_v12, %v2207_v25  ;;  %v1100_v29 = vsel %vm877_vm12, %v2204_v24, %v1025_v20  ;;  %vm803_vm4 = vcmp.eq.s32.totalorder %v651_v10, %v2229_v33 }
 0x12c   : > { %v1102_v22 = vsel %vm879_vm2, %v2204_v24, %v1027_v21  ;;  %vm805_vm7 = vcmp.eq.s32.totalorder %v653_v12, %v2229_v33  ;;  %1545 = vmatpush1.bf16.msra.mxu0 %v1544_v19  ;;  %v1175_v23 = vsel %vm804_vm0, %v2186_v13, %v1100_v29  ;;  %vm876_vm1 = vcmp.eq.s32.totalorder %v651_v10, %v2242_v35 }
 0x12d   : > { %v1177_v14 = vsel %vm806_vm11, %v2186_v13, %v1102_v22  ;;  %vm878_vm10 = vcmp.eq.s32.totalorder %v653_v12, %v2242_v35  ;;  %v1250_v24 = vsel %vm731_vm8, %v2192_v15, %v1175_v23  ;;  %vm949_vm9 = vcmp.eq.s32.totalorder %v651_v10, %v2245_v36 }
 0x12e   : > { %v1252_v30 = vsel %vm733_vm15, %v2192_v15, %v1177_v14  ;;  %vm951_vm6 = vcmp.eq.s32.totalorder %v653_v12, %v2245_v36  ;;  %v1024_v28 = vsel %vm949_vm9, %v2210_v26, 0.0  ;;  %v1256_v40 = vcombine.high %v1254_v32, %v1254_v32 }
 0x12f   : > { %v1546_v31 = vpack.c.bf16 %v1252_v30, %v1250_v24  ;;  %v1026_v13 = vsel %vm951_vm6, %v2210_v26, 0.0  ;;  %v1099_v35 = vsel %vm876_vm1, %v2213_v27, %v1024_v28 }
 0x130   : > { %v1101_v34 = vsel %vm878_vm10, %v2213_v27, %v1026_v13  ;;  %v1174_v18 = vsel %vm803_vm4, %v2195_v16, %v1099_v35  ;;  %1322 = vmatprep.mubr.f32.mxu0 %v1256_v40 }
 0x131   : > { %1547 = vmatprep.subr.bf16.mxu0 %v1546_v31  ;;  %v1176_v15 = vsel %vm805_vm7, %v2195_v16, %v1101_v34  ;;  %v1249_v36 = vsel %vm730_vm3, %v2198_v17, %v1174_v18 }
 0x132   : > { %v1251_v26 = vsel %vm732_vm5, %v2198_v17, %v1176_v15 }
 0x133   : > { %v1548_v37 = vpack.c.bf16 %v1251_v26, %v1249_v36 }
 0x135   : > { %1549 = vmatpush1.bf16.msra.mxu0 %v1548_v37 }
 0x138   : > { %1323 = vmatmul.mubr.f32.vlgmr.msra.gmra.mrb[0].mxu0 %v1254_v32 }
 0x20b   : > { %v1324_v27 = vpop.f32.mrb[0].mxu0 }
 0x20c   : > { %v1326_v2 = vpop.f32.mrb[1].mxu0 }
 0x20d   : > { %v1331_v41 = vcombine.low %v1324_v27, %v1326_v2 }
 0x20f   : > { %v1333_v42 = vadd.f32 %v1331_v41, %v1253_v38 }
 0x211   : > { %1334 = vst [vmem:[#allocation2] sm:$0xff] %v1333_v42 }
 0x212 PF: > { %s1485_s25 = sshll.u32 %s1809_s8, 7  ;;  %s1357_s13 = sshll.u32 %s238_s28, 4  ;;  %s1358_s13 = int_to_ptr.vmem [resolvable:$true] %s1357_s13 }
 0x213   : > { %s3009_s5 = scalar_lea.hbm %s3067_s4, %s1485_s25  ;;  %s1341_s15 = scalar_lea.sflag [#allocation11], %s236_s27 }
 0x214   : > { %s1709_s16 = scalar_lea.vmem %s1358_s13, 128  ;;  %p3100_p2 = scmp.ne.s32.totalorder %s3076_s23, 0 }
 0x215   : > { %p1710_p12 = scmp.ne.s32.totalorder %s1358_s13, %s1709_s16  ;;  %s1824_s21 = smov [#allocation12]  }
 0x216   : > { %s1713_s11 = sshll.u32 %s1824_s21, 4  ;;  %s1714_s11 = int_to_ptr.vmem [resolvable:$false] %s1713_s11 }
 0x217   : > { %p1711_p10 = pnand %p1710_p12, %p3100_p2  ;;  %s1715_s8 = scalar_lea.vmem %s1714_s11, 256 }
 0x218   : > { %v1338_v16 = vld [vmem:[#allocation2] sm:$0xff]  ;;  %p1716_p13 = scmp.lt.s32.totalorder %s1358_s13, %s1714_s11  ;;  %p1717_p4 = scmp.lt.s32.totalorder %s1715_s8, %s1709_s16 }
 0x219   : > { %1339 = vst [vmem:[%s238_s28] sm:$0xff] %v1338_v16  ;;  %p1712_p7 = pneg %p1711_p10 }
 0x21a   : > { %p1718_p6 = por %p1717_p4, %p1716_p13 }
 0x21c   : > { %p1719_p11 = pnand %p1718_p6, %p1712_p7 }
 0x21e   : > { %1722 = shalt.err (!%p1719_p11)
}
 0x21f   : > { %s1723_s27 = scalar_lea.hbm %s3009_s5, 128  ;;  %s1727_s17 = scalar_lea.hbm %s3067_s4, 256 }
 0x220   : > { %p1724_p0 = scmp.ne.s32.totalorder %s3009_s5, %s1723_s27  ;;  %p1728_p8 = scmp.lt.u32.totalorder %s3009_s5, %s3067_s4 }
 0x221   : > { %p1729_p1 = scmp.lt.u32.totalorder %s1727_s17, %s1723_s27  ;;  %p1731_p12 = scmp.lt.u32.totalorder %s1723_s27, %s3009_s5 }
 0x222   : > { %p1725_p3 = pnand %p1724_p0, %p3100_p2 }
 0x223   : > { %p1730_p5 = por %p1729_p1, %p1728_p8 }
 0x224   : > { %p1726_p9 = pneg %p1725_p3 }
 0x225   : > { %p1732_p10 = por %p1731_p12, %p1730_p5 }
 0x227   : > { %p1733_p7 = pnand %p1732_p10, %p1726_p9 }
 0x229   : > { %1736 = shalt.err (!%p1733_p7)
}
 0x22a   : > { %1564 = dma.vmem_to_hbm [thread:$0]  (%p3100_p2), %s1358_s13, 128, %s3009_s5, %s1341_s15  }
 0x22b PF: > { %s1369_s28 = sand.u32 1, %s1785_s0   ;;  %p3101_p13 = scmp.ne.s32.totalorder %s3077_s26, 0 }
 0x22c   : > { %p3102_p4 = scmp.ge.s32.totalorder %s1817_s10, 2  ;;  %s1370_s19 = scalar_lea.sflag [#allocation11], %s1369_s28 }
 0x22e   : > { %p1575_p6 = pnand %p3102_p4, %p3101_p13 }
 0x230   : > { %1780 = dma.done.wait (!%p1575_p6), %s1370_s19, 128  }
 0x231   : > { %1782 = vsyncadd (!%p1575_p6), %s1370_s19, 4294967168  ;;  %s28_s10 = sadd.s32 1, %s1817_s10   ;;  %s3103_s23 = sld [smem:[#allocation20_spill]] }
 0x232   : > { %p25_p11 = scmp.ge.s32.totalorder %s28_s10, 4   ;;  %s3104_s7 = sld [smem:[#allocation22_spill]] }
 0x233   : > { %s3105_s24 = sld [smem:[#allocation21_spill]]  ;;  %s3106_s0 = smov %s1789_s1 }
 0x234   : > { %s3107_s1 = smov %s1793_s30  ;;  %s3108_s30 = smov %s1932_s22 }
 0x235   : > { %s3109_s5 = smov %s1801_s6  ;;  %s3111_s8 = smov %s1813_s9 }
 0x236   :  { %27 = sbr.rel (!%p25_p11) target bundleno = 30 (0x1e), region = 95 }
 0x237   : > { %s3110_s6 = smov %s3103_s23 }
 0x239   : > { %s3112_s9 = smov %s3105_s24 }
 0x23d   :  { %1375 = vsyncpa [#allocation10], 1 }
 0x23e   :  { %1377 = vsyncpa [#allocation10 + $0x1], 1 }
 0x23f   :  { %1378 = vsyncpa [#allocation11], 1 }
 0x240   :  { %1380 = vsyncpa [#allocation11 + $0x1], 1 }

</bundles_post_ra>
